<compile_context>
chip_gen: v5e
topology: v5e:2x2
jax: 0.10.0
libtpu: 0.0.40
codegen_flags: <defaults>
</compile_context>

<pallas_src>
import math

import jax
import jax.numpy as jnp
from jax import lax
from jax.experimental import pallas as pl
from jax.experimental.pallas import tpu as pltpu


# ---------------------------------------------------------------------------
# Phase 1: GroupNorm affine + Q/K/V projection (runs once per element).
# ---------------------------------------------------------------------------
def _gn_qkv_kernel(x_ref, sc_ref, sh_ref, wq_ref, wk_ref, wv_ref, bqkv_ref,
                   q_ref, k_ref, v_ref):
    """One (batch, seq-tile) step.

      x_ref   : (1, C, TS) f32   raw x tile, channels-first (PyTorch layout)
      sc/sh   : (1, 1, C)  f32   folded GroupNorm scale / shift (per batch, channel)
      wq/wk/wv: (C, C)     bf16  projection weights stored (c_in, c_out);
                                 wq pre-scaled by 1/sqrt(d_head)
      bqkv    : (3, C)     f32   rows = (bq*scale, bk, bv), lane-major
      q/k/v   : (1, TS, C) bf16  sequence-major outputs
    """
    # Single layout change for the whole block (XLU, once per element) so every
    # matmul here and in the flash kernel is a plain, untransposed MXU dot.
    xt = x_ref[0].T                                                      # (TS, C) f32
    xn = (xt * sc_ref[0] + sh_ref[0]).astype(jnp.bfloat16)               # GroupNorm = one FMA
    biases = bqkv_ref[...]                                               # (3, C) f32
    q = jnp.dot(xn, wq_ref[...], preferred_element_type=jnp.float32) + biases[0:1, :]
    k = jnp.dot(xn, wk_ref[...], preferred_element_type=jnp.float32) + biases[1:2, :]
    v = jnp.dot(xn, wv_ref[...], preferred_element_type=jnp.float32) + biases[2:3, :]
    q_ref[0] = q.astype(jnp.bfloat16)
    k_ref[0] = k.astype(jnp.bfloat16)
    v_ref[0] = v.astype(jnp.bfloat16)


# ---------------------------------------------------------------------------
# Phase 2: flash-style attention + out-projection + bias + residual.
# ---------------------------------------------------------------------------
def _flash_attn_kernel(q_ref, k_ref, v_ref, xq_ref, wo_ref, bo_ref, o_ref,
                       m_sc, l_sc, acc_sc):
    """One (batch, q-tile, kv-tile) step.

      q_ref : (1, TQ, C) bf16  projected Q tile (resident across kv steps)
      k_ref : (1, TK, C) bf16  projected K tile
      v_ref : (1, TK, C) bf16  projected V tile
      xq_ref: (1, C, TQ) f32   raw x tile (residual; resident across kv steps)
      wo    : (C, C) bf16 ; bo : (C, 1) f32
      o_ref : (1, C, TQ)       channels-first, lane-dense store
      scratch: m_sc/l_sc (TQ, 1) f32, acc_sc (TQ, C) f32
    """
    kv = pl.program_id(2)

    @pl.when(kv == 0)
    def _init():
        m_sc[...] = jnp.full_like(m_sc, -jnp.inf)
        l_sc[...] = jnp.zeros_like(l_sc)
        acc_sc[...] = jnp.zeros_like(acc_sc)

    # ---- online softmax update; both hot-loop matmuls run straight on the MXU,
    #      no layout changes, no (HW, HW) matrix ever materialized ----
    s = lax.dot_general(q_ref[0], k_ref[0], (((1,), (1,)), ((), ())),
                        preferred_element_type=jnp.float32)              # (TQ, TK)
    m_prev = m_sc[...]
    m_new = jnp.maximum(m_prev, jnp.max(s, axis=-1, keepdims=True))      # (TQ, 1)
    alpha = jnp.exp(m_prev - m_new)
    p = jnp.exp(s - m_new)                                               # (TQ, TK) f32
    l_sc[...] = alpha * l_sc[...] + jnp.sum(p, axis=-1, keepdims=True)
    acc_sc[...] = alpha * acc_sc[...] + jnp.dot(
        p.astype(jnp.bfloat16), v_ref[0], preferred_element_type=jnp.float32)
    m_sc[...] = m_new

    @pl.when(kv == pl.num_programs(2) - 1)
    def _finalize():
        # Exact softmax normalization (cold path, once per q tile), out-projection
        # back to channels-first, bias + residual, lane-dense store (lanes = TQ).
        attn = (acc_sc[...] / l_sc[...]).astype(jnp.bfloat16)            # (TQ, C)
        out_cf = lax.dot_general(wo_ref[...], attn, (((1,), (1,)), ((), ())),
                                 preferred_element_type=jnp.float32)     # (C, TQ)
        o_ref[0] = (out_cf + bo_ref[...] + xq_ref[0]).astype(o_ref.dtype)


# ---------------------------------------------------------------------------
# Wrapper
# ---------------------------------------------------------------------------
def _pick_tile(total: int, target: int, unit: int = 128) -> int:
    """Largest multiple-of-`unit` divisor of `total` that is <= target; falls back
    to `total` (single full-extent block, always BlockSpec-legal)."""
    if total <= target:
        return total
    t = (target // unit) * unit
    while t >= unit:
        if total % t == 0:
            return t
        t -= unit
    return total


def _vmem_limit(estimate_bytes: int) -> int:
    """Scoped-VMEM limit derived from the footprint (+25% and 4 MiB headroom for
    Mosaic-internal temps), floored at 32 MiB and capped below v5e/v6e physical."""
    return int(max(32 << 20, min(int(estimate_bytes * 1.25) + (4 << 20), 100 << 20)))


def vae_attention_block(x, gamma, beta, w_in, b_in, w_out, b_out, *,
                        num_groups=32, eps=1e-5,
                        q_tile=512, kv_tile=1024, proj_tile=1024):
    """x: (N, C, H, W) float32 (PyTorch NCHW).  Returns the same shape/dtype.

    Defaults keep the working set v7x-safe (64 MiB VMEM); on v5e/v6e (128 MiB)
    pass q_tile=kv_tile=1024 for fewer grid steps."""
    N, C, H, W = x.shape
    if C % num_groups != 0:
        raise ValueError(f"channels ({C}) must be divisible by num_groups ({num_groups})")
    HW = H * W
    xs = x.reshape(N, C, HW)          # channels-first sequence view: pure reshape

    # ---- tiny XLA prologue: GroupNorm statistics (two-pass f32 variance, matches
    #      PyTorch), folded with gamma/beta into one scale/shift per (batch,
    #      channel), stored lane-major. ----
    cpg = C // num_groups
    xg = xs.reshape(N, num_groups, cpg * HW).astype(jnp.float32)
    mean = xg.mean(axis=-1)                                    # (N, G)
    var = xg.var(axis=-1)                                      # (N, G), biased
    inv = lax.rsqrt(var + eps)
    mean_c = jnp.repeat(mean, cpg, axis=1)                     # (N, C)
    inv_c = jnp.repeat(inv, cpg, axis=1)                       # (N, C)
    scale = (inv_c * gamma[None, :]).reshape(N, 1, C).astype(jnp.float32)
    shift = (beta[None, :] - mean_c * inv_c * gamma[None, :]
             ).reshape(N, 1, C).astype(jnp.float32)

    # ---- weights: split in_proj, transpose to (c_in, c_out) so the phase-1
    #      matmuls are plain xn @ W, fold 1/sqrt(d_head) into Wq/bq, cast bf16 ----
    att_scale = 1.0 / math.sqrt(C)                             # single head -> d_head == C
    wq_t = (w_in[:C] * att_scale).T.astype(jnp.bfloat16)       # (C, C)
    wk_t = w_in[C:2 * C].T.astype(jnp.bfloat16)
    wv_t = w_in[2 * C:].T.astype(jnp.bfloat16)
    bqkv = jnp.stack([b_in[:C] * att_scale, b_in[C:2 * C], b_in[2 * C:]]
                     ).astype(jnp.float32)                     # (3, C), lane-major
    wo = w_out.astype(jnp.bfloat16)                            # (c_out, c_in)
    bo = b_out.astype(jnp.float32).reshape(C, 1)

    # ================= phase 1: GroupNorm affine + Q/K/V projection ============
    ts = _pick_tile(HW, proj_tile)
    proj_est = (2 * (C * ts * 4 + 2 * C * 4 + 3 * C * C * 2 + 3 * C * 4
                     + 3 * ts * C * 2)
                + 6 * ts * C * 4)                              # transpose/xn/f32 temps
    qkv_shape = jax.ShapeDtypeStruct((N, HW, C), jnp.bfloat16)
    q, k, v = pl.pallas_call(
        _gn_qkv_kernel,
        out_shape=(qkv_shape, qkv_shape, qkv_shape),
        grid_spec=pltpu.PrefetchScalarGridSpec(
            num_scalar_prefetch=0,
            grid=(N, HW // ts),
            in_specs=[
                pl.BlockSpec((1, C, ts), lambda b, t: (b, 0, t)),   # raw x tile
                pl.BlockSpec((1, 1, C), lambda b, t: (b, 0, 0)),    # GN scale
                pl.BlockSpec((1, 1, C), lambda b, t: (b, 0, 0)),    # GN shift
                pl.BlockSpec((C, C), lambda b, t: (0, 0)),          # Wq^T (pre-scaled)
                pl.BlockSpec((C, C), lambda b, t: (0, 0)),          # Wk^T
                pl.BlockSpec((C, C), lambda b, t: (0, 0)),          # Wv^T
                pl.BlockSpec((3, C), lambda b, t: (0, 0)),          # packed biases
            ],
            out_specs=(
                pl.BlockSpec((1, ts, C), lambda b, t: (b, t, 0)),   # Q (seq-major)
                pl.BlockSpec((1, ts, C), lambda b, t: (b, t, 0)),   # K (seq-major)
                pl.BlockSpec((1, ts, C), lambda b, t: (b, t, 0)),   # V (seq-major)
            ),
        ),
        compiler_params=pltpu.CompilerParams(
            dimension_semantics=("parallel", "parallel"),
            vmem_limit_bytes=_vmem_limit(proj_est),
        ),
    )(xs, scale, shift, wq_t, wk_t, wv_t, bqkv)

    # ================= phase 2: flash attention + out-proj + residual ==========
    tq = _pick_tile(HW, q_tile)
    if N == 1 and HW // tq < 2:          # feed both v7x TensorCores at N == 1
        half = _pick_tile(HW, max(HW // 2, 128))
        if half < HW:
            tq = half
    tk = _pick_tile(HW, kv_tile)

    flash_est = (2 * (tq * C * 2 + 2 * tk * C * 2 + C * tq * 4 + C * C * 2
                      + C * 128 * 4 + C * tq * 4)              # double-buffered blocks
                 + tq * C * 4 + 2 * tq * 128 * 4               # scratch
                 + 4 * tq * tk * 4 + 3 * tq * C * 4)           # s/p temps

    out = pl.pallas_call(
        _flash_attn_kernel,
        out_shape=jax.ShapeDtypeStruct((N, C, HW), x.dtype),
        grid_spec=pltpu.PrefetchScalarGridSpec(
            num_scalar_prefetch=0,
            grid=(N, HW // tq, HW // tk),
            in_specs=[
                pl.BlockSpec((1, tq, C), lambda b, qi, kv: (b, qi, 0)),   # Q (resident)
                pl.BlockSpec((1, tk, C), lambda b, qi, kv: (b, kv, 0)),   # K
                pl.BlockSpec((1, tk, C), lambda b, qi, kv: (b, kv, 0)),   # V
                pl.BlockSpec((1, C, tq), lambda b, qi, kv: (b, 0, qi)),   # raw x (residual)
                pl.BlockSpec((C, C), lambda b, qi, kv: (0, 0)),           # W_out
                pl.BlockSpec((C, 1), lambda b, qi, kv: (0, 0)),           # b_out
            ],
            out_specs=pl.BlockSpec((1, C, tq), lambda b, qi, kv: (b, 0, qi)),
            scratch_shapes=[
                pltpu.VMEM((tq, 1), jnp.float32),     # running row max
                pltpu.VMEM((tq, 1), jnp.float32),     # running softmax denominator
                pltpu.VMEM((tq, C), jnp.float32),     # running attention accumulator
            ],
        ),
        compiler_params=pltpu.CompilerParams(
            dimension_semantics=("parallel", "parallel", "arbitrary"),
            vmem_limit_bytes=_vmem_limit(flash_est),
        ),
    )(q, k, v, xs, wo, bo)

    return out.reshape(N, C, H, W)


# ---------------------------------------------------------------------------
# Pure-JAX reference (reproduces the PyTorch forward) + self-test
# ---------------------------------------------------------------------------
def reference(x, gamma, beta, w_in, b_in, w_out, b_out, *, num_groups=32, eps=1e-5):
    N, C, H, W = x.shape
    xg = x.reshape(N, num_groups, C // num_groups, H, W)
    mean = xg.mean(axis=(2, 3, 4), keepdims=True)
    var = xg.var(axis=(2, 3, 4), keepdims=True)
    xn = ((xg - mean) / jnp.sqrt(var + eps)).reshape(N, C, H, W)
    xn = xn * gamma[None, :, None, None] + beta[None, :, None, None]
    seq = xn.reshape(N, C, H * W).transpose(0, 2, 1)            # (N, HW, C)
    qkv = seq @ w_in.T + b_in
    q, k, v = jnp.split(qkv, 3, axis=-1)
    s = (q @ jnp.swapaxes(k, -1, -2)) / jnp.sqrt(C)
    p = jax.nn.softmax(s, axis=-1)
    o = p @ v
    o = o @ w_out.T + b_out
    o = o.transpose(0, 2, 1).reshape(N, C, H, W)
    return o + x


if __name__ == "__main__":
    # GroupNorm(32, C) requires C % 32 == 0; C=128 keeps the lane dim aligned.
    N, C, H, W = 2, 128, 16, 16
    key = jax.random.PRNGKey(0)
    ks = jax.random.split(key, 7)
    x = jax.random.normal(ks[0], (N, C, H, W), jnp.float32)
    gamma = 1.0 + 0.1 * jax.random.normal(ks[1], (C,), jnp.float32)
    beta = 0.1 * jax.random.normal(ks[2], (C,), jnp.float32)
    w_in = 0.05 * jax.random.normal(ks[3], (3 * C, C), jnp.float32)   # SelfAttention.in_proj
    b_in = 0.05 * jax.random.normal(ks[4], (3 * C,), jnp.float32)
    w_out = 0.05 * jax.random.normal(ks[5], (C, C), jnp.float32)      # SelfAttention.out_proj
    b_out = 0.05 * jax.random.normal(ks[6], (C,), jnp.float32)

    out = vae_attention_block(x, gamma, beta, w_in, b_in, w_out, b_out)
    out = jax.block_until_ready(out)

    ref = reference(x, gamma, beta, w_in, b_in, w_out, b_out)
    max_err = float(jnp.max(jnp.abs(out - ref)))
    assert out.shape == x.shape and out.dtype == x.dtype
    # bf16 staged Q/K/V + bf16 MXU matmuls -> looser tolerance than pure f32.
    assert max_err < 2e-2, f"max abs err {max_err}"
    print("KERNEL_OK")
</pallas_src>

<mosaic_0001>
module attributes {stable_mosaic.version = 11 : i64} {
  func.func @_gn_qkv_kernel(%arg0: i32, %arg1: i32, %arg2: memref<1x128x256xf32, #tpu.memory_space<vmem>>, %arg3: memref<1x1x128xf32, #tpu.memory_space<vmem>>, %arg4: memref<1x1x128xf32, #tpu.memory_space<vmem>>, %arg5: memref<128x128xbf16, #tpu.memory_space<vmem>>, %arg6: memref<128x128xbf16, #tpu.memory_space<vmem>>, %arg7: memref<128x128xbf16, #tpu.memory_space<vmem>>, %arg8: memref<3x128xf32, #tpu.memory_space<vmem>>, %arg9: memref<1x256x128xbf16, #tpu.memory_space<vmem>>, %arg10: memref<1x256x128xbf16, #tpu.memory_space<vmem>>, %arg11: memref<1x256x128xbf16, #tpu.memory_space<vmem>>) attributes {dimension_semantics = [#tpu.dimension_semantics<parallel>, #tpu.dimension_semantics<parallel>], iteration_bounds = array<i64: 2, 1>, scalar_prefetch = 0 : i64, scratch_operands = 0 : i64, tpu.core_type = #tpu.core_type<tc>, window_params = [{transform_indices = @transform_0, window_bounds = array<i64: 1, 128, 256>}, {transform_indices = @transform_1, window_bounds = array<i64: 1, 1, 128>}, {transform_indices = @transform_2, window_bounds = array<i64: 1, 1, 128>}, {pipeline_mode = #tpu.pipeline_mode<synchronous>, transform_indices = @transform_3, window_bounds = array<i64: 128, 128>}, {pipeline_mode = #tpu.pipeline_mode<synchronous>, transform_indices = @transform_4, window_bounds = array<i64: 128, 128>}, {pipeline_mode = #tpu.pipeline_mode<synchronous>, transform_indices = @transform_5, window_bounds = array<i64: 128, 128>}, {pipeline_mode = #tpu.pipeline_mode<synchronous>, transform_indices = @transform_6, window_bounds = array<i64: 3, 128>}, {transform_indices = @transform_7, window_bounds = array<i64: 1, 256, 128>}, {transform_indices = @transform_8, window_bounds = array<i64: 1, 256, 128>}, {transform_indices = @transform_9, window_bounds = array<i64: 1, 256, 128>}]} {
    %c0 = arith.constant 0 : index
    %c0_0 = arith.constant 0 : index
    %c0_1 = arith.constant 0 : index
    %0 = vector.load %arg2[%c0, %c0_0, %c0_1] : memref<1x128x256xf32, #tpu.memory_space<vmem>>, vector<1x128x256xf32>
    %1 = vector.shape_cast %0 : vector<1x128x256xf32> to vector<128x256xf32>
    %2 = tpu.transpose %1, [1, 0] : vector<128x256xf32> -> vector<256x128xf32>
    %c0_2 = arith.constant 0 : index
    %c0_3 = arith.constant 0 : index
    %c0_4 = arith.constant 0 : index
    %3 = vector.load %arg3[%c0_2, %c0_3, %c0_4] : memref<1x1x128xf32, #tpu.memory_space<vmem>>, vector<1x1x128xf32>
    %4 = vector.shape_cast %3 : vector<1x1x128xf32> to vector<1x128xf32>
    %5 = vector.broadcast %4 : vector<1x128xf32> to vector<256x128xf32>
    %6 = arith.mulf %2, %5 : vector<256x128xf32>
    %c0_5 = arith.constant 0 : index
    %c0_6 = arith.constant 0 : index
    %c0_7 = arith.constant 0 : index
    %7 = vector.load %arg4[%c0_5, %c0_6, %c0_7] : memref<1x1x128xf32, #tpu.memory_space<vmem>>, vector<1x1x128xf32>
    %8 = vector.shape_cast %7 : vector<1x1x128xf32> to vector<1x128xf32>
    %9 = vector.broadcast %8 : vector<1x128xf32> to vector<256x128xf32>
    %10 = arith.addf %6, %9 : vector<256x128xf32>
    %11 = arith.truncf %10 : vector<256x128xf32> to vector<256x128xbf16>
    %c0_8 = arith.constant 0 : index
    %c0_9 = arith.constant 0 : index
    %12 = vector.load %arg8[%c0_8, %c0_9] : memref<3x128xf32, #tpu.memory_space<vmem>>, vector<3x128xf32>
    %c0_10 = arith.constant 0 : index
    %c0_11 = arith.constant 0 : index
    %13 = vector.load %arg5[%c0_10, %c0_11] : memref<128x128xbf16, #tpu.memory_space<vmem>>, vector<128x128xbf16>
    %cst = arith.constant dense<0.000000e+00> : vector<256x128xf32>
    %14 = tpu.matmul %11, %13, %cst {dimension_numbers = #tpu.dot_dimension_numbers<[1], [0], [0], [1], [0, 0, 1, 1], [], []>} : vector<256x128xbf16>, vector<128x128xbf16>, vector<256x128xf32> -> vector<256x128xf32>
    %15 = vector.extract_strided_slice %12 {offsets = [0, 0], sizes = [1, 128], strides = [1, 1]} : vector<3x128xf32> to vector<1x128xf32>
    %16 = vector.broadcast %15 : vector<1x128xf32> to vector<256x128xf32>
    %17 = arith.addf %14, %16 : vector<256x128xf32>
    %c0_12 = arith.constant 0 : index
    %c0_13 = arith.constant 0 : index
    %18 = vector.load %arg6[%c0_12, %c0_13] : memref<128x128xbf16, #tpu.memory_space<vmem>>, vector<128x128xbf16>
    %cst_14 = arith.constant dense<0.000000e+00> : vector<256x128xf32>
    %19 = tpu.matmul %11, %18, %cst_14 {dimension_numbers = #tpu.dot_dimension_numbers<[1], [0], [0], [1], [0, 0, 1, 1], [], []>} : vector<256x128xbf16>, vector<128x128xbf16>, vector<256x128xf32> -> vector<256x128xf32>
    %20 = vector.extract_strided_slice %12 {offsets = [1, 0], sizes = [1, 128], strides = [1, 1]} : vector<3x128xf32> to vector<1x128xf32>
    %21 = vector.broadcast %20 : vector<1x128xf32> to vector<256x128xf32>
    %22 = arith.addf %19, %21 : vector<256x128xf32>
    %c0_15 = arith.constant 0 : index
    %c0_16 = arith.constant 0 : index
    %23 = vector.load %arg7[%c0_15, %c0_16] : memref<128x128xbf16, #tpu.memory_space<vmem>>, vector<128x128xbf16>
    %cst_17 = arith.constant dense<0.000000e+00> : vector<256x128xf32>
    %24 = tpu.matmul %11, %23, %cst_17 {dimension_numbers = #tpu.dot_dimension_numbers<[1], [0], [0], [1], [0, 0, 1, 1], [], []>} : vector<256x128xbf16>, vector<128x128xbf16>, vector<256x128xf32> -> vector<256x128xf32>
    %25 = vector.extract_strided_slice %12 {offsets = [2, 0], sizes = [1, 128], strides = [1, 1]} : vector<3x128xf32> to vector<1x128xf32>
    %26 = vector.broadcast %25 : vector<1x128xf32> to vector<256x128xf32>
    %27 = arith.addf %24, %26 : vector<256x128xf32>
    %28 = arith.truncf %17 : vector<256x128xf32> to vector<256x128xbf16>
    %c0_18 = arith.constant 0 : index
    %c0_19 = arith.constant 0 : index
    %c0_20 = arith.constant 0 : index
    %29 = vector.load %arg9[%c0_18, %c0_19, %c0_20] : memref<1x256x128xbf16, #tpu.memory_space<vmem>>, vector<1x256x128xbf16>
    %30 = vector.shape_cast %29 : vector<1x256x128xbf16> to vector<256x128xbf16>
    %31 = vector.shape_cast %28 : vector<256x128xbf16> to vector<1x256x128xbf16>
    tpu.vector_store %arg9[%c0_18, %c0_19, %c0_20], %31 {strides = array<i32>} : memref<1x256x128xbf16, #tpu.memory_space<vmem>>, vector<1x256x128xbf16>,
    %32 = arith.truncf %22 : vector<256x128xf32> to vector<256x128xbf16>
    %c0_21 = arith.constant 0 : index
    %c0_22 = arith.constant 0 : index
    %c0_23 = arith.constant 0 : index
    %33 = vector.load %arg10[%c0_21, %c0_22, %c0_23] : memref<1x256x128xbf16, #tpu.memory_space<vmem>>, vector<1x256x128xbf16>
    %34 = vector.shape_cast %33 : vector<1x256x128xbf16> to vector<256x128xbf16>
    %35 = vector.shape_cast %32 : vector<256x128xbf16> to vector<1x256x128xbf16>
    tpu.vector_store %arg10[%c0_21, %c0_22, %c0_23], %35 {strides = array<i32>} : memref<1x256x128xbf16, #tpu.memory_space<vmem>>, vector<1x256x128xbf16>,
    %36 = arith.truncf %27 : vector<256x128xf32> to vector<256x128xbf16>
    %c0_24 = arith.constant 0 : index
    %c0_25 = arith.constant 0 : index
    %c0_26 = arith.constant 0 : index
    %37 = vector.load %arg11[%c0_24, %c0_25, %c0_26] : memref<1x256x128xbf16, #tpu.memory_space<vmem>>, vector<1x256x128xbf16>
    %38 = vector.shape_cast %37 : vector<1x256x128xbf16> to vector<256x128xbf16>
    %39 = vector.shape_cast %36 : vector<256x128xbf16> to vector<1x256x128xbf16>
    tpu.vector_store %arg11[%c0_24, %c0_25, %c0_26], %39 {strides = array<i32>} : memref<1x256x128xbf16, #tpu.memory_space<vmem>>, vector<1x256x128xbf16>,
    return
  }
  func.func @transform_0(%arg0: i32, %arg1: i32) -> (i32, i32, i32) {
    %c0_i32 = arith.constant 0 : i32
    %c0_i32_0 = arith.constant 0 : i32
    return %arg0, %c0_i32, %arg1 : i32, i32, i32
  }
  func.func @transform_1(%arg0: i32, %arg1: i32) -> (i32, i32, i32) {
    %c0_i32 = arith.constant 0 : i32
    %c0_i32_0 = arith.constant 0 : i32
    %c0_i32_1 = arith.constant 0 : i32
    return %arg0, %c0_i32, %c0_i32_0 : i32, i32, i32
  }
  func.func @transform_2(%arg0: i32, %arg1: i32) -> (i32, i32, i32) {
    %c0_i32 = arith.constant 0 : i32
    %c0_i32_0 = arith.constant 0 : i32
    %c0_i32_1 = arith.constant 0 : i32
    return %arg0, %c0_i32, %c0_i32_0 : i32, i32, i32
  }
  func.func @transform_3(%arg0: i32, %arg1: i32) -> (i32, i32) {
    %c0_i32 = arith.constant 0 : i32
    %c0_i32_0 = arith.constant 0 : i32
    %c0_i32_1 = arith.constant 0 : i32
    return %c0_i32, %c0_i32_0 : i32, i32
  }
  func.func @transform_4(%arg0: i32, %arg1: i32) -> (i32, i32) {
    %c0_i32 = arith.constant 0 : i32
    %c0_i32_0 = arith.constant 0 : i32
    %c0_i32_1 = arith.constant 0 : i32
    return %c0_i32, %c0_i32_0 : i32, i32
  }
  func.func @transform_5(%arg0: i32, %arg1: i32) -> (i32, i32) {
    %c0_i32 = arith.constant 0 : i32
    %c0_i32_0 = arith.constant 0 : i32
    %c0_i32_1 = arith.constant 0 : i32
    return %c0_i32, %c0_i32_0 : i32, i32
  }
  func.func @transform_6(%arg0: i32, %arg1: i32) -> (i32, i32) {
    %c0_i32 = arith.constant 0 : i32
    %c0_i32_0 = arith.constant 0 : i32
    %c0_i32_1 = arith.constant 0 : i32
    return %c0_i32, %c0_i32_0 : i32, i32
  }
  func.func @transform_7(%arg0: i32, %arg1: i32) -> (i32, i32, i32) {
    %c0_i32 = arith.constant 0 : i32
    %c0_i32_0 = arith.constant 0 : i32
    return %arg0, %arg1, %c0_i32 : i32, i32, i32
  }
  func.func @transform_8(%arg0: i32, %arg1: i32) -> (i32, i32, i32) {
    %c0_i32 = arith.constant 0 : i32
    %c0_i32_0 = arith.constant 0 : i32
    return %arg0, %arg1, %c0_i32 : i32, i32, i32
  }
  func.func @transform_9(%arg0: i32, %arg1: i32) -> (i32, i32, i32) {
    %c0_i32 = arith.constant 0 : i32
    %c0_i32_0 = arith.constant 0 : i32
    return %arg0, %arg1, %c0_i32 : i32, i32, i32
  }
}

</mosaic_0001>

<bundles_post_ra>
// kernel: tpu_custom_call.1
= control target key start
LH: loop header
LB: loop body
LE: loop exit
PB: predicated region body
PF: predicated region fallthrough
CT: control target
= control target key end

     0   :  { %s3229_s0 = inlined_call_operand.hbm [shape: f32[2,128,256], index: 0, kind: input, shape index: {}]   ;;  %s3230_s1 = inlined_call_operand.hbm [shape: f32[2,1,128], index: 1, kind: input, shape index: {}]   ;;  %s3231_s2 = inlined_call_operand.hbm [shape: f32[2,1,128], index: 2, kind: input, shape index: {}]   ;;  %s3232_s3 = inlined_call_operand.hbm [shape: bf16[128,128], index: 3, kind: input, shape index: {}]   ;;  %s3233_s4 = inlined_call_operand.hbm [shape: bf16[128,128], index: 4, kind: input, shape index: {}]   ;;  %s3234_s5 = inlined_call_operand.hbm [shape: bf16[128,128], index: 5, kind: input, shape index: {}]   ;;  %s3235_s6 = inlined_call_operand.vmem [shape: f32[3,128], index: 6, kind: input, shape index: {}]   ;;  %s3236_s7 = inlined_call_operand.hbm [shape: bf16[2,256,128], index: 7, kind: output, shape index: {0}]   ;;  %s3237_s8 = inlined_call_operand.hbm [shape: bf16[2,256,128], index: 8, kind: output, shape index: {1}]   ;;  %s3238_s9 = inlined_call_operand.hbm [shape: bf16[2,256,128], index: 9, kind: output, shape index: {2}]  }
   0x1   :  { %3253 = sst [smem:[#allocation30_spill]] %s3230_s1 }
   0x2   :  { %3254 = sst [smem:[#allocation31_spill]] %s3232_s3 }
   0x3   :  { %3255 = sst [smem:[#allocation32_spill]] %s3233_s4 }
   0x4   :  { %3256 = sst [smem:[#allocation33_spill]] %s3234_s5 }
   0x5   :  { %3257 = sst [smem:[#allocation34_spill]] %s3238_s9 }
   0x6   :  { %15 = vsyncpa [#allocation3], 0 }
   0x7   :  { %17 = vsyncpa [#allocation3 + $0x1], 0 }
   0x8   :  { %18 = vsyncpa [#allocation6], 0 }
   0x9   :  { %20 = vsyncpa [#allocation6 + $0x1], 0 }
   0xa   :  { %21 = vsyncpa [#allocation9], 0 }
   0xb   :  { %22 = vsyncpa [#allocation12], 0 }
   0xc   :  { %23 = vsyncpa [#allocation4], 0 }
   0xd   :  { %25 = vsyncpa [#allocation4 + $0x1], 0 }
   0xe   :  { %26 = vsyncpa [#allocation15], 0 }
   0xf   :  { %28 = vsyncpa [#allocation15 + $0x1], 0  ;;  %s2617_s30 = smov 0   ;;  %s2619_s10 = smov 0  }
  0x10   :  { %s2621_s11 = smov 0   ;;  %s2623_s12 = smov 0  }
  0x11   :  { %s2625_s13 = smov 0   ;;  %s2627_s14 = smov 0  }
  0x12 LB: > { %3258 = sst [smem:[#allocation23_spill]] %s2536_s30  ;;  %s2648_s15 = sadd.s32 4294967295, %s2556_s14   ;;  %s2556_s14 = sphi %s2627_s14, %s34_s14   ;;  %s2552_s13 = sphi %s2625_s13, %s3290_s13   ;;  %s2548_s12 = sphi %s2623_s12, %s3289_s12   ;;  %s2544_s11 = sphi %s2621_s11, %s3285_s11   ;;  %s2540_s10 = sphi %s2619_s10, %s3288_s10   ;;  %s2536_s30 = sphi %s2617_s30, %s3287_s30  }
  0x13   : > { %3259 = sst [smem:[#allocation24_spill]] %s2544_s11  ;;  %p1641_p0 = scmp.ge.s32.totalorder %s2556_s14, 1 }
  0x14   : > { %3260 = sst [smem:[#allocation25_spill]] %s2556_s14  ;;  %p69_p1 = scmp.eq.s32.totalorder %s2648_s15, 0 }
  0x15   : > { %p299_p2 = scmp.lt.s32.totalorder %s2556_s14, 3  ;;  %s3261_s3 = sld [smem:[#allocation31_spill]] }
  0x16   : > { %s2558_s20 = smov [#allocation8]   ;;  %s3240_s23 = smov 64  }
  0x17   : > { %p2656_p3 = pnand %p1641_p0, %p299_p2  ;;  %s312_s21 = sshll.u32 %s2558_s20, 4  ;;  %s313_s21 = int_to_ptr.vmem [resolvable:$true] %s312_s21 }
  0x18   : > { %s3242_s24 = smov 4   ;;  %s3239_s25 = sadd.s32 4294967294, %s2556_s14  }
  0x19   : > { %p2125_p4 = pneg %p2656_p3  ;;  %s46_s26 = sadd.s32 1, %s2552_s13 }
  0x1a   : > { %s55_s27 = sadd.s32 1, %s2544_s11  ;;  %p48_p7 = scmp.ge.s32.totalorder %s46_s26, 2 }
  0x1b   : > { %s310_s18 = sshll.u32 %s3261_s3, 4  ;;  %p2664_p5 = pnand %p2125_p4, %p69_p1  ;;  %s311_s18 = int_to_ptr.hbm [resolvable:$true] %s310_s18 }
  0x1c   : > { %p62_p8 = scmp.ne.s32.totalorder %s2544_s11, %s2540_s10  ;;  %p63_p9 = scmp.eq.s32.totalorder %s2556_s14, 0 }
  0x1d   : > { %2128 = dma.hbm_to_vmem [thread:$0]  (!%p2664_p5), %s311_s18, 1024, %s313_s21, [#allocation9], %s3240_s23, %s3240_s23, %s3242_s24  }
  0x1e   : > { %p68_p10 = scmp.ne.s32.totalorder %s2540_s10, %s2536_s30  ;;  %s3292_s26 = smov (%p48_p7, %s46_s26), 0 }
  0x1f   : > { %3264 = sst [smem:[#allocation26_spill]] %s3292_s26  ;;  %p64_p11 = por %p63_p9, %p62_p8 }
  0x20   : > { %p2686_p12 = por %p69_p1, %p68_p10  ;;  %s50_s29 = ssub.s32 %s2552_s13, %s3292_s26 }
  0x21   : > { %p230_p13 = scmp.eq.s32.totalorder %s2648_s15, 1  ;;  %p53_p0 = scmp.eq.s32.totalorder %s50_s29, 0 }
  0x22   : > { %p236_p2 = scmp.eq.s32.totalorder %s3239_s25, 1  ;;  %p2158_p6 = scmp.lt.s32.totalorder %s2556_s14, 2 }
  0x23   : > { %p2695_p4 = por %p230_p13, %p62_p8  ;;  %s2708_s20 = sand.u32 1, %s2544_s11  }
  0x24   : > { %s2701_s17 = scalar_select %p53_p0, %s2544_s11, %s55_s27  }
  0x25   : > { %s3266_s16 = scalar_select %p2695_p4, 1, 0 }
  0x26   : > { %3268 = sst [smem:[#allocation28_spill]] %s2701_s17  ;;  %p2703_p7 = por %p236_p2, %p68_p10 }
  0x27   : > { %3267 = sst [smem:[#allocation27_spill]] %s3266_s16  ;;  %p2710_p9 = pnand %p2158_p6, %p64_p11 }
  0x28   : > { %s3269_s18 = scalar_select %p2703_p7, 1, 0 }
  0x29   : > { %s381_s29 = sand.u32 1, %s2556_s14   ;;  %s3272_s1 = sld [smem:[#allocation30_spill]] }
  0x2a   : > { %3270 = sst [smem:[#allocation29_spill]] %s3269_s18  ;;  %s384_s3 = scalar_lea.vmem [#allocation5], %s2708_s20 }
  0x2b   : > { %s391_s26 = sshll.u32 %s384_s3, 4  ;;  %s2720_s17 = scalar_lea.sflag [#allocation6], %s381_s29  ;;  %s392_s26 = int_to_ptr.vmem [resolvable:$true] %s391_s26 }
  0x2c   : > { %s3273_s4 = sld [smem:[#allocation32_spill]]  ;;  %s2561_s23 = smov [#allocation10]  }
  0x2d   : > { %s326_s25 = sshll.u32 %s2561_s23, 4  ;;  %s3274_s5 = sld [smem:[#allocation33_spill]]  ;;  %s327_s25 = int_to_ptr.vmem [resolvable:$true] %s326_s25 }
  0x2e   : > { %s3275_s30 = smov 4   ;;  %s3276_s29 = smov 64  }
  0x2f   : > { %s387_s24 = scalar_lea.hbm %s3272_s1, %s2552_s13  ;;  %s1646_s18 = sshll.u32 %s2708_s20, 8 }
  0x30   : > { %s389_s27 = sshll.u32 %s387_s24, 4  ;;  %s2564_s9 = smov 16   ;;  %s390_s27 = int_to_ptr.hbm [resolvable:$true] %s389_s27 }
  0x31   : > { %2141 = dma.hbm_to_vmem [thread:$0]  (!%p2710_p9), %s390_s27, 16, %s392_s26, %s2720_s17  }
  0x32   : > { %s324_s14 = sshll.u32 %s3273_s4, 4  ;;  %s2562_s26 = smov [#allocation11]   ;;  %s325_s14 = int_to_ptr.hbm [resolvable:$true] %s324_s14 }
  0x33   : > { %s338_s1 = sshll.u32 %s3274_s5, 4  ;;  %s340_s11 = sshll.u32 %s2562_s26, 4  ;;  %s339_s1 = int_to_ptr.hbm [resolvable:$true] %s338_s1  ;;  %s341_s11 = int_to_ptr.vmem [resolvable:$true] %s340_s11 }
  0x34   : > { %2131 = dma.hbm_to_vmem [thread:$0]  (!%p2664_p5), %s325_s14, 1024, %s327_s25, [#allocation9], %s3276_s29, %s3276_s29, %s3275_s30  }
  0x35   : > { %2134 = dma.hbm_to_vmem [thread:$0]  (!%p2664_p5), %s339_s1, 1024, %s341_s11, [#allocation12], %s3276_s29, %s3276_s29, %s3275_s30  }
  0x36   : > { %s1764_s27 = sshll.u32 %s2552_s13, 8  ;;  %s361_s14 = scalar_lea.vmem [#allocation2], %s1646_s18 }
  0x37   : > { %s368_s3 = scalar_lea.hbm %s3229_s0, %s1764_s27  ;;  %s371_s25 = sshll.u32 %s361_s14, 4  ;;  %s372_s25 = int_to_ptr.vmem [resolvable:$true] %s371_s25 }
  0x38   : > { %s369_s4 = sshll.u32 %s368_s3, 4  ;;  %s358_s26 = scalar_lea.sflag [#allocation3], %s2708_s20  ;;  %s370_s4 = int_to_ptr.hbm [resolvable:$true] %s369_s4 }
  0x39   : > { %s2563_s5 = smov 256   ;;  %s404_s1 = scalar_lea.hbm %s3231_s2, %s2552_s13 }
  0x3a   : > { %2138 = dma.hbm_to_vmem [thread:$0]  (!%p2710_p9), %s370_s4, 4096, %s372_s25, %s358_s26, %s2563_s5, %s2563_s5, %s2564_s9  }
  0x3b   : > { %s401_s30 = scalar_lea.vmem [#allocation7], %s2708_s20  ;;  %s406_s11 = sshll.u32 %s404_s1, 4  ;;  %s407_s11 = int_to_ptr.hbm [resolvable:$true] %s406_s11 }
  0x3c   : > { %s408_s29 = sshll.u32 %s401_s30, 4  ;;  %417 = sbr.rel (%p2656_p3) target bundleno = 648 (0x288), region = 48  ;;  %s409_s29 = int_to_ptr.vmem [resolvable:$true] %s408_s29 }
  0x3d   : > { %2144 = dma.hbm_to_vmem [thread:$0]  (!%p2710_p9), %s407_s11, 16, %s409_s29, %s2720_s17  }
  0x3e   : > { %s2760_s18 = sand.u32 (!%p2656_p3), 1, %s2540_s10  }
  0x3f   : > { %s1650_s4 = sshll.u32 (!%p2656_p3), %s2760_s18, 8  ;;  %s420_s5 = scalar_lea.sflag (!%p2656_p3), [#allocation3], %s2760_s18 }
  0x40   : > { %s2764_s9 = scalar_lea.vmem (!%p2656_p3), [#allocation2], %s1650_s4 }
  0x41   : > { %2511 = dma.done.wait (%p2686_p12), %s420_s5, 4096  }
  0x42   : > { %2513 = vsyncadd (%p2686_p12), %s420_s5, 4294963200  ;;  %s429_s19 = sand.u32 1, %s2648_s15   ;;  %s432_s17 = scalar_lea.vmem [#allocation5], %s2760_s18 }
  0x43   : > { %s430_s16 = scalar_lea.sflag [#allocation6], %s429_s19 }
  0x44   : > { %2515 = dma.done.wait (%p2686_p12), %s430_s16, 32  }
  0x45   : > { %2517 = vsyncadd (%p2686_p12), %s430_s16, 4294967264  ;;  %s441_s20 = scalar_lea.vmem [#allocation7], %s2760_s18 }
  0x46   : > { %2519 = dma.done.wait (%p69_p1), [#allocation9], 2048  }
  0x47   : > { %2521 = vsyncadd (%p69_p1), [#allocation9], 4294965248 }
  0x48   : > { %2523 = dma.done.wait (%p69_p1), [#allocation12], 1024  }
  0x49   : > { %2525 = vsyncadd (%p69_p1), [#allocation12], 4294966272  ;;  %v515_v0 = vld [vmem:[%s2764_s9 + $0x8] sm:$0xff]  ;;  %v514_v1 = vld [vmem:[%s2764_s9] sm:$0xff]  ;;  %s1654_s27 = sshll.u32 %s2760_s18, 7  ;;  %s3107_s14 = sshll.u32 %s2548_s12, 7 }
  0x4a   : > { %578 = vxpose.xlu0.b32.start [1/16] %v515_v0, 128  ;;  %546 = vxpose.xlu1.b32.start [1/16] %v514_v1, 128  ;;  %v517_v2 = vld [vmem:[%s2764_s9 + $0x18] sm:$0xff]  ;;  %v516_v3 = vld [vmem:[%s2764_s9 + $0x10] sm:$0xff]  ;;  %v519_v4 = vld [vmem:[%s2764_s9 + $0x28] sm:$0xff]  ;;  %s2969_s23 = scalar_lea.vmem [#allocation13], %s1654_s27  ;;  %s2973_s24 = scalar_lea.vmem [#allocation14], %s1654_s27 }
  0x4b   : > { %v518_v5 = vld [vmem:[%s2764_s9 + $0x20] sm:$0xff]  ;;  %v521_v6 = vld [vmem:[%s2764_s9 + $0x38] sm:$0xff]  ;;  %v520_v7 = vld [vmem:[%s2764_s9 + $0x30] sm:$0xff]  ;;  %s2979_s3 = scalar_lea.vmem [#allocation16], %s1654_s27  ;;  %s1377_s22 = scalar_lea.hbm %s3236_s7, %s3107_s14 }
  0x4c   : > { %v523_v8 = vld [vmem:[%s2764_s9 + $0x48] sm:$0xff]  ;;  %v522_v9 = vld [vmem:[%s2764_s9 + $0x40] sm:$0xff]  ;;  %v525_v10 = vld [vmem:[%s2764_s9 + $0x58] sm:$0xff]  ;;  %s1378_s12 = sshll.u32 %s2969_s23, 4  ;;  %s3117_s1 = sshll.u32 %s1377_s22, 4  ;;  %s3125_s12 = int_to_ptr.vmem [resolvable:$true] %s1378_s12  ;;  %s1381_s1 = int_to_ptr.hbm [resolvable:$true] %s3117_s1 }
  0x4d   : > { %v524_v11 = vld [vmem:[%s2764_s9 + $0x50] sm:$0xff]  ;;  %v527_v12 = vld [vmem:[%s2764_s9 + $0x68] sm:$0xff]  ;;  %v526_v13 = vld [vmem:[%s2764_s9 + $0x60] sm:$0xff]  ;;  %s1396_s11 = scalar_lea.hbm %s3237_s8, %s3107_s14  ;;  %s1397_s5 = sshll.u32 %s2973_s24, 4  ;;  %s1398_s5 = int_to_ptr.vmem [resolvable:$true] %s1397_s5 }
  0x4e   : > { %v529_v14 = vld [vmem:[%s2764_s9 + $0x78] sm:$0xff]  ;;  %v528_v15 = vld [vmem:[%s2764_s9 + $0x70] sm:$0xff]  ;;  %v531_v16 = vld [vmem:[%s2764_s9 + $0x88] sm:$0xff]  ;;  %s1354_s16 = scalar_lea.sflag [#allocation4], %s2760_s18  ;;  %s2422_s27 = scalar_lea.hbm %s3236_s7, 256 }
  0x4f   : > { %v530_v17 = vld [vmem:[%s2764_s9 + $0x80] sm:$0xff]  ;;  %v533_v18 = vld [vmem:[%s2764_s9 + $0x98] sm:$0xff]  ;;  %v532_v19 = vld [vmem:[%s2764_s9 + $0x90] sm:$0xff] }
  0x50   : > { %v535_v20 = vld [vmem:[%s2764_s9 + $0xa8] sm:$0xff]  ;;  %v534_v21 = vld [vmem:[%s2764_s9 + $0xa0] sm:$0xff]  ;;  %v537_v22 = vld [vmem:[%s2764_s9 + $0xb8] sm:$0xff] }
  0x51   : > { %v536_v23 = vld [vmem:[%s2764_s9 + $0xb0] sm:$0xff]  ;;  %v1772_v24 = vld [vmem:[#allocation8 + $0x38] sm:$0xff]  ;;  %v539_v30 = vld [vmem:[%s2764_s9 + $0xc8] sm:$0xff] }
  0x52   : > { %579 = vxpose.xlu0.b32.cont [2/16] %v517_v2, 128  ;;  %547 = vxpose.xlu1.b32.cont [2/16] %v516_v3, 128  ;;  %v2811_v25 = vld [vmem:[#allocation10 + $0x38] sm:$0xff]  ;;  %v1771_v27 = vld [vmem:[#allocation8 + $0x30] sm:$0xff]  ;;  %v1770_v32 = vld [vmem:[#allocation8 + $0x28] sm:$0xff] }
  0x53   : > { %v2813_v26 = vld [vmem:[#allocation11 + $0x38] sm:$0xff]  ;;  %764 = vmatpush.bf16.msra.mxu0 %v1772_v24  ;;  %918 = vmatpush.bf16.msra.mxu1 %v2811_v25  ;;  %v2816_v28 = vld [vmem:[#allocation10 + $0x30] sm:$0xff]  ;;  %v1778_v33 = vld [vmem:[#allocation10 + $0x28] sm:$0xff] }
  0x54   : > { %1072 = vmatpush.bf16.msra.mxu2 %v2813_v26  ;;  %v2819_v29 = vld [vmem:[#allocation11 + $0x30] sm:$0xff]  ;;  %2077 = vmatpush.bf16.msra.mxu3 %v1772_v24  ;;  %v538_v31 = vld [vmem:[%s2764_s9 + $0xc0] sm:$0xff]  ;;  %v2825_v34 = vld [vmem:[#allocation11 + $0x28] sm:$0xff] }
  0x55   : > { %v1769_v35 = vld [vmem:[#allocation8 + $0x20] sm:$0xff]  ;;  %v541_v38 = vld [vmem:[%s2764_s9 + $0xd8] sm:$0xff]  ;;  %v540_v39 = vld [vmem:[%s2764_s9 + $0xd0] sm:$0xff] }
  0x56   : > { %v1777_v36 = vld [vmem:[#allocation10 + $0x20] sm:$0xff]  ;;  %v1768_v40 = vld [vmem:[#allocation8 + $0x18] sm:$0xff]  ;;  %v544_v46 = vld [vmem:[%s2764_s9 + $0xf0] sm:$0xff] }
  0x57   : > { %765 = vmatpush.bf16.msra.mxu0 %v1771_v27  ;;  %919 = vmatpush.bf16.msra.mxu1 %v2816_v28  ;;  %v2828_v37 = vld [vmem:[#allocation11 + $0x20] sm:$0xff]  ;;  %v1776_v41 = vld [vmem:[#allocation10 + $0x18] sm:$0xff]  ;;  %v1767_v47 = vld [vmem:[#allocation8 + $0x10] sm:$0xff] }
  0x58   : > { %1073 = vmatpush.bf16.msra.mxu2 %v2819_v29  ;;  %2078 = vmatpush.bf16.msra.mxu3 %v1771_v27  ;;  %v2833_v42 = vld [vmem:[#allocation11 + $0x18] sm:$0xff]  ;;  %v543_v43 = vld [vmem:[%s2764_s9 + $0xe8] sm:$0xff]  ;;  %v1775_v48 = vld [vmem:[#allocation10 + $0x10] sm:$0xff] }
  0x59   : > { %v542_v44 = vld [vmem:[%s2764_s9 + $0xe0] sm:$0xff]  ;;  %v545_v45 = vld [vmem:[%s2764_s9 + $0xf8] sm:$0xff]  ;;  %v1766_v50 = vld [vmem:[#allocation8 + $0x8] sm:$0xff]  ;;  %s3131_s9 = sshll.u32 %s1396_s11, 4  ;;  %s1400_s9 = int_to_ptr.hbm [resolvable:$true] %s3131_s9 }
  0x5a   : > { %580 = vxpose.xlu0.b32.cont [3/16] %v519_v4, 128  ;;  %548 = vxpose.xlu1.b32.cont [3/16] %v518_v5, 128  ;;  %v2840_v49 = vld [vmem:[#allocation11 + $0x10] sm:$0xff]  ;;  %v1774_v51 = vld [vmem:[#allocation10 + $0x8] sm:$0xff]  ;;  %v1765_v53 = vld [vmem:[#allocation8] sm:$0xff] }
  0x5b   : > { %766 = vmatpush.bf16.msra.mxu0 %v1770_v32  ;;  %920 = vmatpush.bf16.msra.mxu1 %v1778_v33  ;;  %v2843_v52 = vld [vmem:[#allocation11 + $0x8] sm:$0xff]  ;;  %v1773_v54 = vld [vmem:[#allocation10] sm:$0xff]  ;;  %v2853_v58 = vld [vmem:[%s432_s17] ss:$0 sm:$0xff]  ;;  %s2416_s17 = sshra.s32 %s1381_s1, 4  ;;  %s2417_s17 = int_to_ptr.hbm [resolvable:$true] %s2416_s17 }
  0x5c   : > { %1074 = vmatpush.bf16.msra.mxu2 %v2825_v34  ;;  %2079 = vmatpush.bf16.msra.mxu3 %v1770_v32  ;;  %v2846_v55 = vld [vmem:[#allocation11] sm:$0xff]  ;;  %v2858_v60 = vld [vmem:[%s441_s20] ss:$0 sm:$0xff]  ;;  %s2418_s20 = scalar_lea.hbm %s2417_s17, 128  ;;  %p2423_p6 = scmp.lt.s32.totalorder %s2417_s17, %s3236_s7 }
  0x5d   : > { %p2419_p1 = scmp.ne.s32.totalorder %s2417_s17, %s2418_s20  ;;  %p2424_p8 = scmp.lt.s32.totalorder %s2422_s27, %s2418_s20 }
  0x5f   : > { %767 = vmatpush.bf16.msra.mxu0 %v1769_v35  ;;  %921 = vmatpush.bf16.msra.mxu1 %v1777_v36  ;;  %p2420_p3 = pnand %p2419_p1, %p2695_p4  ;;  %p2425_p10 = por %p2424_p8, %p2423_p6 }
  0x60   : > { %1075 = vmatpush.bf16.msra.mxu2 %v2828_v37  ;;  %2080 = vmatpush.bf16.msra.mxu3 %v1769_v35 }
  0x61   : > { %p2421_p5 = pneg %p2420_p3 }
  0x62   : > { %581 = vxpose.xlu0.b32.cont [4/16] %v521_v6, 128  ;;  %549 = vxpose.xlu1.b32.cont [4/16] %v520_v7, 128 }
  0x63   : > { %768 = vmatpush.bf16.msra.mxu0 %v1768_v40  ;;  %922 = vmatpush.bf16.msra.mxu1 %v1776_v41  ;;  %p2426_p11 = pnand %p2425_p10, %p2421_p5 }
  0x64   : > { %1076 = vmatpush.bf16.msra.mxu2 %v2833_v42  ;;  %2081 = vmatpush.bf16.msra.mxu3 %v1768_v40 }
  0x67   : > { %769 = vmatpush.bf16.msra.mxu0 %v1767_v47  ;;  %923 = vmatpush.bf16.msra.mxu1 %v1775_v48 }
  0x68   : > { %1077 = vmatpush.bf16.msra.mxu2 %v2840_v49  ;;  %2082 = vmatpush.bf16.msra.mxu3 %v1767_v47 }
  0x6a   : > { %582 = vxpose.xlu0.b32.cont [5/16] %v523_v8, 128  ;;  %550 = vxpose.xlu1.b32.cont [5/16] %v522_v9, 128 }
  0x6b   : > { %770 = vmatpush.bf16.msra.mxu0 %v1766_v50  ;;  %924 = vmatpush.bf16.msra.mxu1 %v1774_v51 }
  0x6c   : > { %1078 = vmatpush.bf16.msra.mxu2 %v2843_v52  ;;  %2083 = vmatpush.bf16.msra.mxu3 %v1766_v50 }
  0x6f   : > { %771 = vmatpush.bf16.msra.mxu0 %v1765_v53  ;;  %925 = vmatpush.bf16.msra.mxu1 %v1773_v54 }
  0x70   : > { %1079 = vmatpush.bf16.msra.mxu2 %v2846_v55  ;;  %2084 = vmatpush.bf16.msra.mxu3 %v1765_v53 }
  0x72   : > { %583 = vxpose.xlu0.b32.cont [6/16] %v525_v10, 128  ;;  %551 = vxpose.xlu1.b32.cont [6/16] %v524_v11, 128 }
  0x74   : > { %2085 = vmatpush.bf16.msrb.mxu3 %v2811_v25 }
  0x78   : > { %2086 = vmatpush.bf16.msrb.mxu3 %v2816_v28 }
  0x7a   : > { %584 = vxpose.xlu0.b32.cont [7/16] %v527_v12, 128  ;;  %552 = vxpose.xlu1.b32.cont [7/16] %v526_v13, 128 }
  0x7c   : > { %2087 = vmatpush.bf16.msrb.mxu3 %v1778_v33 }
  0x80   : > { %2088 = vmatpush.bf16.msrb.mxu3 %v1777_v36 }
  0x82   : > { %585 = vxpose.xlu0.b32.cont [8/16] %v529_v14, 128  ;;  %553 = vxpose.xlu1.b32.cont [8/16] %v528_v15, 128 }
  0x84   : > { %2089 = vmatpush.bf16.msrb.mxu3 %v1776_v41 }
  0x88   : > { %2090 = vmatpush.bf16.msrb.mxu3 %v1775_v48 }
  0x8a   : > { %586 = vxpose.xlu0.b32.cont [9/16] %v531_v16, 128  ;;  %554 = vxpose.xlu1.b32.cont [9/16] %v530_v17, 128 }
  0x8c   : > { %2091 = vmatpush.bf16.msrb.mxu3 %v1774_v51 }
  0x90   : > { %2092 = vmatpush.bf16.msrb.mxu3 %v1773_v54 }
  0x92   : > { %587 = vxpose.xlu0.b32.cont [10/16] %v533_v18, 128  ;;  %555 = vxpose.xlu1.b32.cont [10/16] %v532_v19, 128 }
  0x9a   : > { %588 = vxpose.xlu0.b32.cont [11/16] %v535_v20, 128  ;;  %556 = vxpose.xlu1.b32.cont [11/16] %v534_v21, 128 }
  0xa2   : > { %589 = vxpose.xlu0.b32.cont [12/16] %v537_v22, 128  ;;  %557 = vxpose.xlu1.b32.cont [12/16] %v536_v23, 128 }
  0xaa   : > { %590 = vxpose.xlu0.b32.cont [13/16] %v539_v30, 128  ;;  %558 = vxpose.xlu1.b32.cont [13/16] %v538_v31, 128 }
  0xb2   : > { %591 = vxpose.xlu0.b32.cont [14/16] %v541_v38, 128  ;;  %559 = vxpose.xlu1.b32.cont [14/16] %v540_v39, 128 }
  0xba   : > { %592 = vxpose.xlu0.b32.cont [15/16] %v543_v43, 128  ;;  %560 = vxpose.xlu1.b32.cont [15/16] %v542_v44, 128 }
  0xc2   : > { %593 = vxpose.xlu0.b32.end [16/16] %v545_v45, 128  ;;  %561 = vxpose.xlu1.b32.end [16/16] %v544_v46, 128 }
  0xee   : > { %v594_v56 = vpop.trf.xlu0  ;;  %v562_v57 = vpop.trf.xlu1 }
  0xef   : > { %v614_v59 = vmul.f32 %v2853_v58, %v562_v57  ;;  %v630_v61 = vmul.f32 %v2853_v58, %v594_v56 }
  0xf1   : > { %v650_v0 = vadd.f32 %v2858_v60, %v614_v59  ;;  %v666_v3 = vadd.f32 %v2858_v60, %v630_v61 }
  0xf6   : > { %v595_v62 = vpop.trf.xlu0  ;;  %v563_v63 = vpop.trf.xlu1 }
  0xf7   : > { %v631_v1 = vmul.f32 %v2853_v58, %v595_v62  ;;  %v615_v2 = vmul.f32 %v2853_v58, %v563_v63 }
  0xf9   : > { %v667_v4 = vadd.f32 %v2858_v60, %v631_v1  ;;  %v651_v5 = vadd.f32 %v2858_v60, %v615_v2 }
  0xfb   : > { %v682_v6 = vpack.c.bf16 %v651_v5, %v650_v0  ;;  %v2867_v7 = vpack.c.bf16 %v667_v4, %v666_v3 }
  0xfd   : > { %772 = vmatmul.bf16.vlgmr.msra.gmra.mxu0 %v682_v6  ;;  %926 = vmatmul.bf16.vlgmr.msra.gmra.mxu1 %v682_v6 }
  0xfe   : > { %1080 = vmatmul.bf16.vlgmr.msra.gmra.mxu2 %v682_v6  ;;  %v596_v8 = vpop.trf.xlu0  ;;  %v564_v9 = vpop.trf.xlu1 }
  0xff   : > { %v616_v10 = vmul.f32 %v2853_v58, %v564_v9  ;;  %v632_v11 = vmul.f32 %v2853_v58, %v596_v8 }
 0x101   : > { %v652_v14 = vadd.f32 %v2858_v60, %v616_v10  ;;  %v668_v17 = vadd.f32 %v2858_v60, %v632_v11 }
 0x106   : > { %v597_v12 = vpop.trf.xlu0  ;;  %v565_v13 = vpop.trf.xlu1 }
 0x107   : > { %v633_v15 = vmul.f32 %v2853_v58, %v597_v12  ;;  %v617_v16 = vmul.f32 %v2853_v58, %v565_v13 }
 0x109   : > { %v669_v18 = vadd.f32 %v2858_v60, %v633_v15  ;;  %v653_v19 = vadd.f32 %v2858_v60, %v617_v16 }
 0x10b   : > { %v683_v20 = vpack.c.bf16 %v653_v19, %v652_v14  ;;  %v2877_v21 = vpack.c.bf16 %v669_v18, %v668_v17 }
 0x10d   : > { %777 = vmatmul.bf16.gmra.mxu0 %v683_v20  ;;  %931 = vmatmul.bf16.gmra.mxu1 %v683_v20 }
 0x10e   : > { %1085 = vmatmul.bf16.gmra.mxu2 %v683_v20  ;;  %v598_v22 = vpop.trf.xlu0  ;;  %v566_v23 = vpop.trf.xlu1 }
 0x10f   : > { %v618_v24 = vmul.f32 %v2853_v58, %v566_v23  ;;  %v634_v25 = vmul.f32 %v2853_v58, %v598_v22 }
 0x111   : > { %v654_v30 = vadd.f32 %v2858_v60, %v618_v24  ;;  %v670_v33 = vadd.f32 %v2858_v60, %v634_v25 }
 0x116   : > { %v599_v27 = vpop.trf.xlu0  ;;  %v567_v28 = vpop.trf.xlu1 }
 0x117   : > { %v635_v31 = vmul.f32 %v2853_v58, %v599_v27  ;;  %v619_v32 = vmul.f32 %v2853_v58, %v567_v28 }
 0x119   : > { %v671_v35 = vadd.f32 %v2858_v60, %v635_v31  ;;  %v655_v36 = vadd.f32 %v2858_v60, %v619_v32 }
 0x11b   : > { %v684_v38 = vpack.c.bf16 %v655_v36, %v654_v30  ;;  %v2887_v39 = vpack.c.bf16 %v671_v35, %v670_v33 }
 0x11d   : > { %782 = vmatmul.bf16.gmra.mxu0 %v684_v38  ;;  %936 = vmatmul.bf16.gmra.mxu1 %v684_v38 }
 0x11e   : > { %1090 = vmatmul.bf16.gmra.mxu2 %v684_v38  ;;  %v600_v40 = vpop.trf.xlu0  ;;  %v568_v41 = vpop.trf.xlu1 }
 0x11f   : > { %v620_v43 = vmul.f32 %v2853_v58, %v568_v41  ;;  %v636_v44 = vmul.f32 %v2853_v58, %v600_v40 }
 0x121   : > { %v656_v47 = vadd.f32 %v2858_v60, %v620_v43  ;;  %v672_v51 = vadd.f32 %v2858_v60, %v636_v44 }
 0x126   : > { %v601_v45 = vpop.trf.xlu0  ;;  %v569_v46 = vpop.trf.xlu1 }
 0x127   : > { %v637_v48 = vmul.f32 %v2853_v58, %v601_v45  ;;  %v621_v50 = vmul.f32 %v2853_v58, %v569_v46 }
 0x129   : > { %v673_v53 = vadd.f32 %v2858_v60, %v637_v48  ;;  %v657_v54 = vadd.f32 %v2858_v60, %v621_v50 }
 0x12b   : > { %v685_v56 = vpack.c.bf16 %v657_v54, %v656_v47  ;;  %v2897_v57 = vpack.c.bf16 %v673_v53, %v672_v51  ;;  %v698_v54 = vld [vmem:[%s3235_s6] sm:$0x7] }
 0x12d   : > { %787 = vmatmul.bf16.gmra.mxu0 %v685_v56  ;;  %941 = vmatmul.bf16.gmra.mxu1 %v685_v56 }
 0x12e   : > { %1095 = vmatmul.bf16.gmra.mxu2 %v685_v56  ;;  %v602_v59 = vpop.trf.xlu0  ;;  %v570_v61 = vpop.trf.xlu1 }
 0x12f   : > { %v622_v62 = vmul.f32 %v2853_v58, %v570_v61  ;;  %v638_v63 = vmul.f32 %v2853_v58, %v602_v59  ;;  %v2954_v59 = vperm.slane %v698_v54, 0  ;;  %v2956_v61 = vperm.slane %v698_v54, 1 }
 0x131   : > { %v658_v2 = vadd.f32 %v2858_v60, %v622_v62  ;;  %v674_v5 = vadd.f32 %v2858_v60, %v638_v63 }
 0x136   : > { %v603_v0 = vpop.trf.xlu0  ;;  %v571_v1 = vpop.trf.xlu1 }
 0x137   : > { %v639_v3 = vmul.f32 %v2853_v58, %v603_v0  ;;  %v623_v4 = vmul.f32 %v2853_v58, %v571_v1 }
 0x139   : > { %v675_v6 = vadd.f32 %v2858_v60, %v639_v3  ;;  %v659_v8 = vadd.f32 %v2858_v60, %v623_v4  ;;  %v2967_v4 = vperm.slane %v698_v54, 2 }
 0x13b   : > { %v686_v9 = vpack.c.bf16 %v659_v8, %v658_v2  ;;  %v2907_v10 = vpack.c.bf16 %v675_v6, %v674_v5 }
 0x13d   : > { %792 = vmatmul.bf16.gmra.mxu0 %v686_v9  ;;  %832 = vmatmul.bf16.vlgmr.msra.gmra.mxu3 %v2907_v10 }
 0x13e   : > { %946 = vmatmul.bf16.gmra.mxu1 %v686_v9  ;;  %1100 = vmatmul.bf16.gmra.mxu2 %v686_v9  ;;  %v604_v11 = vpop.trf.xlu0  ;;  %v572_v12 = vpop.trf.xlu1 }
 0x13f   : > { %2093 = vmatpush.bf16.msra.mxu3 %v2813_v26  ;;  %v624_v13 = vmul.f32 %v2853_v58, %v572_v12  ;;  %v640_v14 = vmul.f32 %v2853_v58, %v604_v11 }
 0x141   : > { %v660_v17 = vadd.f32 %v2858_v60, %v624_v13  ;;  %v676_v20 = vadd.f32 %v2858_v60, %v640_v14 }
 0x143   : > { %2094 = vmatpush.bf16.msra.mxu3 %v2819_v29 }
 0x146   : > { %v605_v15 = vpop.trf.xlu0  ;;  %v573_v16 = vpop.trf.xlu1 }
 0x147   : > { %v641_v18 = vmul.f32 %v2853_v58, %v605_v15  ;;  %v625_v19 = vmul.f32 %v2853_v58, %v573_v16  ;;  %2095 = vmatpush.bf16.msra.mxu3 %v2825_v34 }
 0x149   : > { %v677_v26 = vadd.f32 %v2858_v60, %v641_v18  ;;  %v661_v22 = vadd.f32 %v2858_v60, %v625_v19 }
 0x14b   : > { %v687_v23 = vpack.c.bf16 %v661_v22, %v660_v17  ;;  %v2921_v29 = vpack.c.bf16 %v677_v26, %v676_v20  ;;  %2096 = vmatpush.bf16.msra.mxu3 %v2828_v37 }
 0x14d   : > { %797 = vmatmul.bf16.gmra.mxu0 %v687_v23  ;;  %837 = vmatmul.bf16.gmra.mxu3 %v2921_v29 }
 0x14e   : > { %951 = vmatmul.bf16.gmra.mxu1 %v687_v23  ;;  %1105 = vmatmul.bf16.gmra.mxu2 %v687_v23  ;;  %v606_v24 = vpop.trf.xlu0  ;;  %v574_v25 = vpop.trf.xlu1 }
 0x14f   : > { %2097 = vmatpush.bf16.msra.mxu3 %v2833_v42  ;;  %v626_v34 = vmul.f32 %v2853_v58, %v574_v25  ;;  %v642_v27 = vmul.f32 %v2853_v58, %v606_v24 }
 0x151   : > { %v662_v31 = vadd.f32 %v2858_v60, %v626_v34  ;;  %v678_v33 = vadd.f32 %v2858_v60, %v642_v27 }
 0x153   : > { %2098 = vmatpush.bf16.msra.mxu3 %v2840_v49 }
 0x156   : > { %v607_v28 = vpop.trf.xlu0  ;;  %v575_v30 = vpop.trf.xlu1 }
 0x157   : > { %v643_v37 = vmul.f32 %v2853_v58, %v607_v28  ;;  %v627_v32 = vmul.f32 %v2853_v58, %v575_v30  ;;  %2099 = vmatpush.bf16.msra.mxu3 %v2843_v52 }
 0x159   : > { %v679_v42 = vadd.f32 %v2858_v60, %v643_v37  ;;  %v663_v35 = vadd.f32 %v2858_v60, %v627_v32 }
 0x15b   : > { %v688_v36 = vpack.c.bf16 %v663_v35, %v662_v31  ;;  %v2936_v49 = vpack.c.bf16 %v679_v42, %v678_v33  ;;  %2100 = vmatpush.bf16.msra.mxu3 %v2846_v55 }
 0x15d   : > { %802 = vmatmul.bf16.gmra.mxu0 %v688_v36  ;;  %842 = vmatmul.bf16.gmra.mxu3 %v2936_v49 }
 0x15e   : > { %956 = vmatmul.bf16.gmra.mxu1 %v688_v36  ;;  %1110 = vmatmul.bf16.gmra.mxu2 %v688_v36  ;;  %v608_v38 = vpop.trf.xlu0  ;;  %v576_v40 = vpop.trf.xlu1 }
 0x15f   : > { %v628_v52 = vmul.f32 %v2853_v58, %v576_v40  ;;  %v644_v41 = vmul.f32 %v2853_v58, %v608_v38 }
 0x161   : > { %v664_v45 = vadd.f32 %v2858_v60, %v628_v52  ;;  %v680_v55 = vadd.f32 %v2858_v60, %v644_v41 }
 0x166   : > { %v609_v43 = vpop.trf.xlu0  ;;  %v577_v44 = vpop.trf.xlu1 }
 0x167   : > { %v645_v46 = vmul.f32 %v2853_v58, %v609_v43  ;;  %v629_v47 = vmul.f32 %v2853_v58, %v577_v44 }
 0x169   : > { %v681_v48 = vadd.f32 %v2858_v60, %v645_v46  ;;  %v665_v50 = vadd.f32 %v2858_v60, %v629_v47 }
 0x16b   : > { %v689_v51 = vpack.c.bf16 %v665_v50, %v664_v45  ;;  %v2948_v53 = vpack.c.bf16 %v681_v48, %v680_v55 }
 0x16d   : > { %807 = vmatmul.bf16.gmra.mxu0 %v689_v51  ;;  %847 = vmatmul.bf16.gmra.mxu3 %v2948_v53 }
 0x16e   : > { %961 = vmatmul.bf16.gmra.mxu1 %v689_v51  ;;  %1115 = vmatmul.bf16.gmra.mxu2 %v689_v51 }
 0x17a   : > { %v773_v58 = vpop.f32.mrf.mxu0  ;;  %v927_v56 = vpop.f32.mrf.mxu1 }
 0x17b   : > { %v774_v60 = vadd.f32 %v773_v58, %v2954_v59  ;;  %v928_v62 = vadd.f32 %v927_v56, %v2956_v61 }
 0x17d   : > { %812 = vmatmul.bf16.gmra.mxu0 %v2867_v7  ;;  %986 = vmatmul.bf16.vlgmr.msrb.gmra.mxu3 %v2907_v10 }
 0x17e   : > { %966 = vmatmul.bf16.gmra.mxu1 %v2867_v7  ;;  %1120 = vmatmul.bf16.gmra.mxu2 %v2867_v7 }
 0x181   : > { %v1081_v63 = vpop.f32.mrf.mxu2 }
 0x182   : > { %v775_v0 = vpop.f32.mrf.mxu0  ;;  %v929_v1 = vpop.f32.mrf.mxu1  ;;  %v1082_v7 = vadd.f32 %v1081_v63, %v2967_v4 }
 0x183   : > { %v776_v2 = vadd.f32 %v775_v0, %v2954_v59  ;;  %v930_v3 = vadd.f32 %v929_v1, %v2956_v61 }
 0x185   : > { %v1795_v5 = vpack.c.bf16 %v776_v2, %v774_v60  ;;  %v1875_v6 = vpack.c.bf16 %v930_v3, %v928_v62 }
 0x187   : > { %1796 = vst [vmem:[%s2969_s23] sm:$0xff] %v1795_v5  }
 0x188   : > { %1876 = vst [vmem:[%s2973_s24] sm:$0xff] %v1875_v6  }
 0x189   : > { %v1083_v8 = vpop.f32.mrf.mxu2 }
 0x18a   : > { %v1084_v9 = vadd.f32 %v1083_v8, %v2967_v4  ;;  %v778_v11 = vpop.f32.mrf.mxu0  ;;  %v932_v12 = vpop.f32.mrf.mxu1 }
 0x18b   : > { %v779_v14 = vadd.f32 %v778_v11, %v2954_v59  ;;  %v933_v15 = vadd.f32 %v932_v12, %v2956_v61 }
 0x18c   : > { %v1955_v13 = vpack.c.bf16 %v1084_v9, %v1082_v7 }
 0x18d   : > { %817 = vmatmul.bf16.gmra.mxu0 %v2877_v21  ;;  %991 = vmatmul.bf16.gmra.mxu3 %v2921_v29 }
 0x18e   : > { %1956 = vst [vmem:[%s2979_s3] sm:$0xff] %v1955_v13   ;;  %971 = vmatmul.bf16.gmra.mxu1 %v2877_v21  ;;  %1125 = vmatmul.bf16.gmra.mxu2 %v2877_v21 }
 0x191   : > { %v1086_v16 = vpop.f32.mrf.mxu2 }
 0x192   : > { %v780_v17 = vpop.f32.mrf.mxu0  ;;  %v934_v18 = vpop.f32.mrf.mxu1  ;;  %v1087_v23 = vadd.f32 %v1086_v16, %v2967_v4 }
 0x193   : > { %v781_v19 = vadd.f32 %v780_v17, %v2954_v59  ;;  %v935_v20 = vadd.f32 %v934_v18, %v2956_v61 }
 0x195   : > { %v1800_v26 = vpack.c.bf16 %v781_v19, %v779_v14  ;;  %v1880_v22 = vpack.c.bf16 %v935_v20, %v933_v15 }
 0x197   : > { %2032 = vst [vmem:[%s2969_s23 + $0x8] sm:$0xff] %v1800_v26  }
 0x198   : > { %2047 = vst [vmem:[%s2973_s24 + $0x8] sm:$0xff] %v1880_v22  }
 0x199   : > { %v1088_v24 = vpop.f32.mrf.mxu2 }
 0x19a   : > { %v1089_v21 = vadd.f32 %v1088_v24, %v2967_v4  ;;  %v783_v25 = vpop.f32.mrf.mxu0  ;;  %v937_v34 = vpop.f32.mrf.mxu1 }
 0x19b   : > { %v784_v28 = vadd.f32 %v783_v25, %v2954_v59  ;;  %v938_v30 = vadd.f32 %v937_v34, %v2956_v61 }
 0x19c   : > { %v1960_v27 = vpack.c.bf16 %v1089_v21, %v1087_v23 }
 0x19d   : > { %822 = vmatmul.bf16.gmra.mxu0 %v2887_v39  ;;  %996 = vmatmul.bf16.gmra.mxu3 %v2936_v49 }
 0x19e   : > { %2062 = vst [vmem:[%s2979_s3 + $0x8] sm:$0xff] %v1960_v27   ;;  %976 = vmatmul.bf16.gmra.mxu1 %v2887_v39  ;;  %1130 = vmatmul.bf16.gmra.mxu2 %v2887_v39 }
 0x1a1   : > { %v1091_v31 = vpop.f32.mrf.mxu2 }
 0x1a2   : > { %v785_v37 = vpop.f32.mrf.mxu0  ;;  %v939_v32 = vpop.f32.mrf.mxu1  ;;  %v1092_v38 = vadd.f32 %v1091_v31, %v2967_v4 }
 0x1a3   : > { %v786_v33 = vadd.f32 %v785_v37, %v2954_v59  ;;  %v940_v42 = vadd.f32 %v939_v32, %v2956_v61 }
 0x1a5   : > { %v1805_v35 = vpack.c.bf16 %v786_v33, %v784_v28  ;;  %v1885_v36 = vpack.c.bf16 %v940_v42, %v938_v30 }
 0x1a7   : > { %2033 = vst [vmem:[%s2969_s23 + $0x10] sm:$0xff] %v1805_v35  }
 0x1a8   : > { %2048 = vst [vmem:[%s2973_s24 + $0x10] sm:$0xff] %v1885_v36  }
 0x1a9   : > { %v1093_v40 = vpop.f32.mrf.mxu2 }
 0x1aa   : > { %v1094_v39 = vadd.f32 %v1093_v40, %v2967_v4  ;;  %v788_v52 = vpop.f32.mrf.mxu0  ;;  %v942_v41 = vpop.f32.mrf.mxu1 }
 0x1ab   : > { %v789_v44 = vadd.f32 %v788_v52, %v2954_v59  ;;  %v943_v45 = vadd.f32 %v942_v41, %v2956_v61 }
 0x1ac   : > { %v1965_v43 = vpack.c.bf16 %v1094_v39, %v1092_v38 }
 0x1ad   : > { %827 = vmatmul.bf16.gmra.mxu0 %v2897_v57  ;;  %1001 = vmatmul.bf16.gmra.mxu3 %v2948_v53 }
 0x1ae   : > { %2063 = vst [vmem:[%s2979_s3 + $0x10] sm:$0xff] %v1965_v43   ;;  %981 = vmatmul.bf16.gmra.mxu1 %v2897_v57  ;;  %1135 = vmatmul.bf16.gmra.mxu2 %v2897_v57 }
 0x1b1   : > { %v1096_v46 = vpop.f32.mrf.mxu2 }
 0x1b2   : > { %v790_v47 = vpop.f32.mrf.mxu0  ;;  %v944_v55 = vpop.f32.mrf.mxu1  ;;  %v1097_v58 = vadd.f32 %v1096_v46, %v2967_v4 }
 0x1b3   : > { %v791_v48 = vadd.f32 %v790_v47, %v2954_v59  ;;  %v945_v50 = vadd.f32 %v944_v55, %v2956_v61 }
 0x1b5   : > { %v1810_v51 = vpack.c.bf16 %v791_v48, %v789_v44  ;;  %v1890_v54 = vpack.c.bf16 %v945_v50, %v943_v45 }
 0x1b7   : > { %2034 = vst [vmem:[%s2969_s23 + $0x18] sm:$0xff] %v1810_v51  }
 0x1b8   : > { %2049 = vst [vmem:[%s2973_s24 + $0x18] sm:$0xff] %v1890_v54  }
 0x1b9   : > { %v1098_v56 = vpop.f32.mrf.mxu2 }
 0x1ba   : > { %v1099_v57 = vadd.f32 %v1098_v56, %v2967_v4  ;;  %v793_v60 = vpop.f32.mrf.mxu0 }
 0x1bb   : > { %v947_v62 = vpop.f32.mrf.mxu1  ;;  %v794_v1 = vadd.f32 %v793_v60, %v2954_v59 }
 0x1bc   : > { %v1970_v63 = vpack.c.bf16 %v1099_v57, %v1097_v58  ;;  %v948_v3 = vadd.f32 %v947_v62, %v2956_v61 }
 0x1bd   : > { %1140 = vmatmul.bf16.vlgmr.msra.gmra.mxu3 %v2907_v10 }
 0x1be   : > { %2064 = vst [vmem:[%s2979_s3 + $0x18] sm:$0xff] %v1970_v63  }
 0x1c0   : > { %v833_v0 = vpop.f32.mrf.mxu3 }
 0x1c1   : > { %v1101_v2 = vpop.f32.mrf.mxu2  ;;  %v834_v13 = vadd.f32 %v833_v0, %v2954_v59 }
 0x1c2   : > { %v795_v5 = vpop.f32.mrf.mxu0  ;;  %v1102_v10 = vadd.f32 %v1101_v2, %v2967_v4 }
 0x1c3   : > { %v796_v6 = vadd.f32 %v795_v5, %v2954_v59  ;;  %v949_v7 = vpop.f32.mrf.mxu1 }
 0x1c4   : > { %v950_v8 = vadd.f32 %v949_v7, %v2956_v61 }
 0x1c5   : > { %v1815_v9 = vpack.c.bf16 %v796_v6, %v794_v1 }
 0x1c6   : > { %v1895_v11 = vpack.c.bf16 %v950_v8, %v948_v3 }
 0x1c7   : > { %2035 = vst [vmem:[%s2969_s23 + $0x20] sm:$0xff] %v1815_v9  }
 0x1c8   : > { %2050 = vst [vmem:[%s2973_s24 + $0x20] sm:$0xff] %v1895_v11   ;;  %v835_v12 = vpop.f32.mrf.mxu3 }
 0x1c9   : > { %v836_v14 = vadd.f32 %v835_v12, %v2954_v59  ;;  %v1103_v15 = vpop.f32.mrf.mxu2 }
 0x1ca   : > { %v1104_v16 = vadd.f32 %v1103_v15, %v2967_v4  ;;  %v798_v17 = vpop.f32.mrf.mxu0 }
 0x1cb   : > { %v1855_v18 = vpack.c.bf16 %v836_v14, %v834_v13  ;;  %v952_v19 = vpop.f32.mrf.mxu1  ;;  %v799_v22 = vadd.f32 %v798_v17, %v2954_v59 }
 0x1cc   : > { %v1975_v20 = vpack.c.bf16 %v1104_v16, %v1102_v10  ;;  %v953_v24 = vadd.f32 %v952_v19, %v2956_v61 }
 0x1cd   : > { %2043 = vst [vmem:[%s2969_s23 + $0x60] sm:$0xff] %v1855_v18   ;;  %1145 = vmatmul.bf16.gmra.mxu3 %v2921_v29 }
 0x1ce   : > { %2065 = vst [vmem:[%s2979_s3 + $0x20] sm:$0xff] %v1975_v20  }
 0x1d0   : > { %v838_v26 = vpop.f32.mrf.mxu3 }
 0x1d1   : > { %v1106_v23 = vpop.f32.mrf.mxu2  ;;  %v839_v37 = vadd.f32 %v838_v26, %v2954_v59 }
 0x1d2   : > { %v800_v21 = vpop.f32.mrf.mxu0  ;;  %v1107_v29 = vadd.f32 %v1106_v23, %v2967_v4 }
 0x1d3   : > { %v801_v25 = vadd.f32 %v800_v21, %v2954_v59  ;;  %v954_v34 = vpop.f32.mrf.mxu1 }
 0x1d4   : > { %v955_v27 = vadd.f32 %v954_v34, %v2956_v61 }
 0x1d5   : > { %v1820_v28 = vpack.c.bf16 %v801_v25, %v799_v22 }
 0x1d6   : > { %v1900_v30 = vpack.c.bf16 %v955_v27, %v953_v24 }
 0x1d7   : > { %2036 = vst [vmem:[%s2969_s23 + $0x28] sm:$0xff] %v1820_v28  }
 0x1d8   : > { %2051 = vst [vmem:[%s2973_s24 + $0x28] sm:$0xff] %v1900_v30   ;;  %v840_v31 = vpop.f32.mrf.mxu3 }
 0x1d9   : > { %v841_v32 = vadd.f32 %v840_v31, %v2954_v59  ;;  %v1108_v33 = vpop.f32.mrf.mxu2 }
 0x1da   : > { %v1109_v42 = vadd.f32 %v1108_v33, %v2967_v4  ;;  %v803_v35 = vpop.f32.mrf.mxu0 }
 0x1db   : > { %v1860_v36 = vpack.c.bf16 %v841_v32, %v839_v37  ;;  %v957_v38 = vpop.f32.mrf.mxu1  ;;  %v804_v52 = vadd.f32 %v803_v35, %v2954_v59 }
 0x1dc   : > { %v1980_v40 = vpack.c.bf16 %v1109_v42, %v1107_v29  ;;  %v958_v43 = vadd.f32 %v957_v38, %v2956_v61 }
 0x1dd   : > { %2044 = vst [vmem:[%s2969_s23 + $0x68] sm:$0xff] %v1860_v36   ;;  %1150 = vmatmul.bf16.gmra.mxu3 %v2936_v49 }
 0x1de   : > { %2066 = vst [vmem:[%s2979_s3 + $0x28] sm:$0xff] %v1980_v40  }
 0x1e0   : > { %v843_v39 = vpop.f32.mrf.mxu3 }
 0x1e1   : > { %v1111_v41 = vpop.f32.mrf.mxu2  ;;  %v844_v51 = vadd.f32 %v843_v39, %v2954_v59 }
 0x1e2   : > { %v805_v44 = vpop.f32.mrf.mxu0  ;;  %v1112_v49 = vadd.f32 %v1111_v41, %v2967_v4 }
 0x1e3   : > { %v806_v45 = vadd.f32 %v805_v44, %v2954_v59  ;;  %v959_v46 = vpop.f32.mrf.mxu1 }
 0x1e4   : > { %v960_v47 = vadd.f32 %v959_v46, %v2956_v61 }
 0x1e5   : > { %v1825_v55 = vpack.c.bf16 %v806_v45, %v804_v52 }
 0x1e6   : > { %v1905_v48 = vpack.c.bf16 %v960_v47, %v958_v43 }
 0x1e7   : > { %2037 = vst [vmem:[%s2969_s23 + $0x30] sm:$0xff] %v1825_v55  }
 0x1e8   : > { %2052 = vst [vmem:[%s2973_s24 + $0x30] sm:$0xff] %v1905_v48   ;;  %v845_v50 = vpop.f32.mrf.mxu3 }
 0x1e9   : > { %v846_v54 = vadd.f32 %v845_v50, %v2954_v59  ;;  %v1113_v58 = vpop.f32.mrf.mxu2 }
 0x1ea   : > { %v1114_v56 = vadd.f32 %v1113_v58, %v2967_v4  ;;  %v808_v57 = vpop.f32.mrf.mxu0 }
 0x1eb   : > { %v1865_v60 = vpack.c.bf16 %v846_v54, %v844_v51  ;;  %v962_v62 = vpop.f32.mrf.mxu1  ;;  %v809_v1 = vadd.f32 %v808_v57, %v2954_v59 }
 0x1ec   : > { %v1985_v63 = vpack.c.bf16 %v1114_v56, %v1112_v49  ;;  %v963_v3 = vadd.f32 %v962_v62, %v2956_v61 }
 0x1ed   : > { %2045 = vst [vmem:[%s2969_s23 + $0x70] sm:$0xff] %v1865_v60   ;;  %1155 = vmatmul.bf16.gmra.mxu3 %v2948_v53 }
 0x1ee   : > { %2067 = vst [vmem:[%s2979_s3 + $0x30] sm:$0xff] %v1985_v63  }
 0x1f0   : > { %v848_v0 = vpop.f32.mrf.mxu3 }
 0x1f1   : > { %v1116_v2 = vpop.f32.mrf.mxu2  ;;  %v849_v12 = vadd.f32 %v848_v0, %v2954_v59 }
 0x1f2   : > { %v810_v5 = vpop.f32.mrf.mxu0  ;;  %v1117_v53 = vadd.f32 %v1116_v2, %v2967_v4 }
 0x1f3   : > { %v811_v6 = vadd.f32 %v810_v5, %v2954_v59  ;;  %v964_v7 = vpop.f32.mrf.mxu1 }
 0x1f4   : > { %v965_v8 = vadd.f32 %v964_v7, %v2956_v61 }
 0x1f5   : > { %v1830_v9 = vpack.c.bf16 %v811_v6, %v809_v1 }
 0x1f6   : > { %v1910_v11 = vpack.c.bf16 %v965_v8, %v963_v3 }
 0x1f7   : > { %2038 = vst [vmem:[%s2969_s23 + $0x38] sm:$0xff] %v1830_v9  }
 0x1f8   : > { %2053 = vst [vmem:[%s2973_s24 + $0x38] sm:$0xff] %v1910_v11   ;;  %v850_v10 = vpop.f32.mrf.mxu3 }
 0x1f9   : > { %v851_v13 = vadd.f32 %v850_v10, %v2954_v59  ;;  %v1118_v14 = vpop.f32.mrf.mxu2 }
 0x1fa   : > { %v1119_v15 = vadd.f32 %v1118_v14, %v2967_v4  ;;  %v813_v16 = vpop.f32.mrf.mxu0 }
 0x1fb   : > { %v1870_v17 = vpack.c.bf16 %v851_v13, %v849_v12  ;;  %v967_v18 = vpop.f32.mrf.mxu1  ;;  %v814_v23 = vadd.f32 %v813_v16, %v2954_v59 }
 0x1fc   : > { %v1990_v19 = vpack.c.bf16 %v1119_v15, %v1117_v53  ;;  %v968_v25 = vadd.f32 %v967_v18, %v2956_v61 }
 0x1fd   : > { %2046 = vst [vmem:[%s2969_s23 + $0x78] sm:$0xff] %v1870_v17  }
 0x1fe   : > { %2068 = vst [vmem:[%s2979_s3 + $0x38] sm:$0xff] %v1990_v19  }
 0x200   : > { %v987_v20 = vpop.f32.mrf.mxu3 }
 0x201   : > { %v1121_v26 = vpop.f32.mrf.mxu2  ;;  %v988_v29 = vadd.f32 %v987_v20, %v2956_v61 }
 0x202   : > { %v815_v22 = vpop.f32.mrf.mxu0  ;;  %v1122_v32 = vadd.f32 %v1121_v26, %v2967_v4 }
 0x203   : > { %v816_v24 = vadd.f32 %v815_v22, %v2954_v59  ;;  %v969_v21 = vpop.f32.mrf.mxu1 }
 0x204   : > { %v970_v34 = vadd.f32 %v969_v21, %v2956_v61 }
 0x205   : > { %v1835_v27 = vpack.c.bf16 %v816_v24, %v814_v23 }
 0x206   : > { %v1915_v28 = vpack.c.bf16 %v970_v34, %v968_v25 }
 0x207   : > { %2039 = vst [vmem:[%s2969_s23 + $0x40] sm:$0xff] %v1835_v27  }
 0x208   : > { %2054 = vst [vmem:[%s2973_s24 + $0x40] sm:$0xff] %v1915_v28   ;;  %v989_v30 = vpop.f32.mrf.mxu3 }
 0x209   : > { %v990_v31 = vadd.f32 %v989_v30, %v2956_v61  ;;  %v1123_v37 = vpop.f32.mrf.mxu2 }
 0x20a   : > { %v1124_v33 = vadd.f32 %v1123_v37, %v2967_v4  ;;  %v818_v42 = vpop.f32.mrf.mxu0 }
 0x20b   : > { %v1935_v35 = vpack.c.bf16 %v990_v31, %v988_v29  ;;  %v972_v36 = vpop.f32.mrf.mxu1  ;;  %v819_v41 = vadd.f32 %v818_v42, %v2954_v59 }
 0x20c   : > { %v1995_v38 = vpack.c.bf16 %v1124_v33, %v1122_v32  ;;  %v973_v45 = vadd.f32 %v972_v36, %v2956_v61 }
 0x20d   : > { %2058 = vst [vmem:[%s2973_s24 + $0x60] sm:$0xff] %v1935_v35  }
 0x20e   : > { %2069 = vst [vmem:[%s2979_s3 + $0x40] sm:$0xff] %v1995_v38  }
 0x210   : > { %v992_v40 = vpop.f32.mrf.mxu3 }
 0x211   : > { %v1126_v39 = vpop.f32.mrf.mxu2  ;;  %v993_v49 = vadd.f32 %v992_v40, %v2956_v61 }
 0x212   : > { %v820_v52 = vpop.f32.mrf.mxu0  ;;  %v1127_v54 = vadd.f32 %v1126_v39, %v2967_v4 }
 0x213   : > { %v821_v43 = vadd.f32 %v820_v52, %v2954_v59  ;;  %v974_v44 = vpop.f32.mrf.mxu1 }
 0x214   : > { %v975_v46 = vadd.f32 %v974_v44, %v2956_v61 }
 0x215   : > { %v1840_v47 = vpack.c.bf16 %v821_v43, %v819_v41 }
 0x216   : > { %v1920_v55 = vpack.c.bf16 %v975_v46, %v973_v45 }
 0x217   : > { %2040 = vst [vmem:[%s2969_s23 + $0x48] sm:$0xff] %v1840_v47  }
 0x218   : > { %2055 = vst [vmem:[%s2973_s24 + $0x48] sm:$0xff] %v1920_v55   ;;  %v994_v48 = vpop.f32.mrf.mxu3 }
 0x219   : > { %v995_v50 = vadd.f32 %v994_v48, %v2956_v61  ;;  %v1128_v51 = vpop.f32.mrf.mxu2 }
 0x21a   : > { %v1129_v58 = vadd.f32 %v1128_v51, %v2967_v4  ;;  %v823_v56 = vpop.f32.mrf.mxu0 }
 0x21b   : > { %v1940_v57 = vpack.c.bf16 %v995_v50, %v993_v49  ;;  %v977_v60 = vpop.f32.mrf.mxu1  ;;  %v824_v2 = vadd.f32 %v823_v56, %v2954_v59 }
 0x21c   : > { %v2000_v62 = vpack.c.bf16 %v1129_v58, %v1127_v54  ;;  %v978_v6 = vadd.f32 %v977_v60, %v2956_v61 }
 0x21d   : > { %2059 = vst [vmem:[%s2973_s24 + $0x68] sm:$0xff] %v1940_v57  }
 0x21e   : > { %2070 = vst [vmem:[%s2979_s3 + $0x48] sm:$0xff] %v2000_v62  }
 0x220   : > { %v997_v63 = vpop.f32.mrf.mxu3 }
 0x221   : > { %v1131_v0 = vpop.f32.mrf.mxu2  ;;  %v998_v53 = vadd.f32 %v997_v63, %v2956_v61 }
 0x222   : > { %v825_v1 = vpop.f32.mrf.mxu0  ;;  %v1132_v13 = vadd.f32 %v1131_v0, %v2967_v4 }
 0x223   : > { %v826_v3 = vadd.f32 %v825_v1, %v2954_v59  ;;  %v979_v5 = vpop.f32.mrf.mxu1 }
 0x224   : > { %v980_v7 = vadd.f32 %v979_v5, %v2956_v61 }
 0x225   : > { %v1845_v8 = vpack.c.bf16 %v826_v3, %v824_v2 }
 0x226   : > { %v1925_v9 = vpack.c.bf16 %v980_v7, %v978_v6 }
 0x227   : > { %2041 = vst [vmem:[%s2969_s23 + $0x50] sm:$0xff] %v1845_v8  }
 0x228   : > { %2056 = vst [vmem:[%s2973_s24 + $0x50] sm:$0xff] %v1925_v9   ;;  %v999_v11 = vpop.f32.mrf.mxu3 }
 0x229   : > { %v1000_v10 = vadd.f32 %v999_v11, %v2956_v61  ;;  %v1133_v12 = vpop.f32.mrf.mxu2 }
 0x22a   : > { %v1134_v14 = vadd.f32 %v1133_v12, %v2967_v4  ;;  %v828_v15 = vpop.f32.mrf.mxu0 }
 0x22b   : > { %v1945_v16 = vpack.c.bf16 %v1000_v10, %v998_v53  ;;  %v982_v17 = vpop.f32.mrf.mxu1  ;;  %v829_v22 = vadd.f32 %v828_v15, %v2954_v59 }
 0x22c   : > { %v2005_v18 = vpack.c.bf16 %v1134_v14, %v1132_v13  ;;  %v983_v21 = vadd.f32 %v982_v17, %v2956_v61 }
 0x22d   : > { %2060 = vst [vmem:[%s2973_s24 + $0x70] sm:$0xff] %v1945_v16  }
 0x22e   : > { %2071 = vst [vmem:[%s2979_s3 + $0x50] sm:$0xff] %v2005_v18  }
 0x230   : > { %v1002_v19 = vpop.f32.mrf.mxu3 }
 0x231   : > { %v1136_v20 = vpop.f32.mrf.mxu2  ;;  %v1003_v28 = vadd.f32 %v1002_v19, %v2956_v61 }
 0x232   : > { %v830_v26 = vpop.f32.mrf.mxu0 }
 0x233   : > { %v831_v23 = vadd.f32 %v830_v26, %v2954_v59  ;;  %v984_v24 = vpop.f32.mrf.mxu1 }
 0x234   : > { %v985_v25 = vadd.f32 %v984_v24, %v2956_v61 }
 0x235   : > { %v1850_v34 = vpack.c.bf16 %v831_v23, %v829_v22 }
 0x236   : > { %v1930_v27 = vpack.c.bf16 %v985_v25, %v983_v21 }
 0x237   : > { %2042 = vst [vmem:[%s2969_s23 + $0x58] sm:$0xff] %v1850_v34  }
 0x238   : > { %2057 = vst [vmem:[%s2973_s24 + $0x58] sm:$0xff] %v1930_v27   ;;  %v1004_v59 = vpop.f32.mrf.mxu3 }
 0x239   : > { %v1005_v30 = vadd.f32 %v1004_v59, %v2956_v61  ;;  %v1138_v29 = vpop.f32.mrf.mxu2 }
 0x23a   : > { %2429 = shalt.err (!%p2426_p11)
}
 0x23b   : > { %s2565_s18 = smov 64   ;;  %s2566_s26 = smov 4   ;;  %v1137_v61 = vadd.f32 %v1136_v20, %v2967_v4  ;;  %v1139_v31 = vadd.f32 %v1138_v29, %v2967_v4  ;;  %v1950_v37 = vpack.c.bf16 %v1005_v30, %v1003_v28 }
 0x23c   : > { %2119 = dma.vmem_to_hbm [thread:$0]  (%p2695_p4), %s3125_s12, 2048, %s1381_s1, %s1354_s16, %s2565_s18, %s2565_s18, %s2566_s26  }
 0x23d   : > { %v2010_v32 = vpack.c.bf16 %v1139_v31, %v1137_v61  ;;  %2061 = vst [vmem:[%s2973_s24 + $0x78] sm:$0xff] %v1950_v37   ;;  %s3157_s22 = scalar_lea.sflag [#allocation15], %s429_s19  ;;  %s2444_s30 = sshra.s32 %s1400_s9, 4  ;;  %s2445_s30 = int_to_ptr.hbm [resolvable:$true] %s2444_s30 }
 0x23e   : > { %s2446_s29 = scalar_lea.hbm %s2445_s30, 128  ;;  %s2450_s11 = scalar_lea.hbm %s3237_s8, 256 }
 0x23f   : > { %2072 = vst [vmem:[%s2979_s3 + $0x58] sm:$0xff] %v2010_v32   ;;  %p2447_p12 = scmp.ne.s32.totalorder %s2445_s30, %s2446_s29  ;;  %p2451_p2 = scmp.lt.s32.totalorder %s2445_s30, %s3237_s8 }
 0x240   : > { %p2452_p9 = scmp.lt.s32.totalorder %s2450_s11, %s2446_s29 }
 0x241   : > { %p2448_p13 = pnand %p2447_p12, %p2695_p4 }
 0x242   : > { %p2453_p1 = por %p2452_p9, %p2451_p2 }
 0x243   : > { %p2449_p0 = pneg %p2448_p13 }
 0x245   : > { %p2454_p3 = pnand %p2453_p1, %p2449_p0 }
 0x247   : > { %2457 = shalt.err (!%p2454_p3)
}
 0x248   : > { %2120 = dma.vmem_to_hbm [thread:$0]  (%p2695_p4), %s1398_s5, 2048, %s1400_s9, %s3157_s22, %s2565_s18, %s2565_s18, %s2566_s26   ;;  %v1141_v33 = vpop.f32.mrf.mxu3 }
 0x249   : > { %v1142_v35 = vadd.f32 %v1141_v33, %v2967_v4  ;;  %s3278_s24 = sld [smem:[#allocation34_spill]]  ;;  %s1416_s20 = sshll.u32 %s2979_s3, 4  ;;  %s1417_s20 = int_to_ptr.vmem [resolvable:$true] %s1416_s20 }
 0x24f   : > { %s1415_s5 = scalar_lea.hbm %s3278_s24, %s3107_s14  ;;  %s2478_s23 = scalar_lea.hbm %s3278_s24, 256 }
 0x250   : > { %v1143_v42 = vpop.f32.mrf.mxu3  ;;  %s1418_s9 = sshll.u32 %s1415_s5, 4  ;;  %s1419_s9 = int_to_ptr.hbm [resolvable:$true] %s1418_s9 }
 0x251   : > { %v1144_v36 = vadd.f32 %v1143_v42, %v2967_v4  ;;  %s2472_s28 = sshra.s32 %s1419_s9, 4  ;;  %s2473_s28 = int_to_ptr.hbm [resolvable:$true] %s2472_s28 }
 0x252   : > { %s2474_s21 = scalar_lea.hbm %s2473_s28, 128  ;;  %p2479_p10 = scmp.lt.s32.totalorder %s2473_s28, %s3278_s24 }
 0x253   : > { %v2015_v38 = vpack.c.bf16 %v1144_v36, %v1142_v35  ;;  %p2475_p5 = scmp.ne.s32.totalorder %s2473_s28, %s2474_s21  ;;  %p2480_p11 = scmp.lt.s32.totalorder %s2478_s23, %s2474_s21 }
 0x255   : > { %2073 = vst [vmem:[%s2979_s3 + $0x60] sm:$0xff] %v2015_v38   ;;  %p2476_p6 = pnand %p2475_p5, %p2695_p4  ;;  %p2481_p12 = por %p2480_p11, %p2479_p10 }
 0x257   : > { %p2477_p8 = pneg %p2476_p6 }
 0x258   : > { %v1146_v40 = vpop.f32.mrf.mxu3 }
 0x259   : > { %v1147_v52 = vadd.f32 %v1146_v40, %v2967_v4  ;;  %p2482_p13 = pnand %p2481_p12, %p2477_p8 }
 0x260   : > { %v1148_v39 = vpop.f32.mrf.mxu3 }
 0x261   : > { %v1149_v41 = vadd.f32 %v1148_v39, %v2967_v4 }
 0x263   : > { %v2020_v43 = vpack.c.bf16 %v1149_v41, %v1147_v52 }
 0x265   : > { %2074 = vst [vmem:[%s2979_s3 + $0x68] sm:$0xff] %v2020_v43  }
 0x268   : > { %v1151_v44 = vpop.f32.mrf.mxu3 }
 0x269   : > { %v1152_v46 = vadd.f32 %v1151_v44, %v2967_v4 }
 0x270   : > { %v1153_v45 = vpop.f32.mrf.mxu3 }
 0x271   : > { %v1154_v47 = vadd.f32 %v1153_v45, %v2967_v4 }
 0x273   : > { %v2025_v55 = vpack.c.bf16 %v1154_v47, %v1152_v46 }
 0x275   : > { %2075 = vst [vmem:[%s2979_s3 + $0x70] sm:$0xff] %v2025_v55  }
 0x278   : > { %v1156_v48 = vpop.f32.mrf.mxu3 }
 0x279   : > { %v1157_v50 = vadd.f32 %v1156_v48, %v2967_v4 }
 0x280   : > { %v1158_v49 = vpop.f32.mrf.mxu3 }
 0x281   : > { %v1159_v51 = vadd.f32 %v1158_v49, %v2967_v4 }
 0x283   : > { %v2030_v54 = vpack.c.bf16 %v1159_v51, %v1157_v50 }
 0x285   : > { %2076 = vst [vmem:[%s2979_s3 + $0x78] sm:$0xff] %v2030_v54  }
 0x286   : > { %2485 = shalt.err (!%p2482_p13)
}
 0x287   : > { %2121 = dma.vmem_to_hbm [thread:$0]  (%p2695_p4), %s1417_s20, 2048, %s1419_s9, %s3157_s22, %s2565_s18, %s2565_s18, %s2566_s26  }
 0x288 PF: > { %s3279_s3 = sld [smem:[#allocation23_spill]] }
 0x289   : > { %s3281_s12 = sld [smem:[#allocation25_spill]] }
 0x28e   : > { %s1433_s1 = sand.u32 1, %s3279_s3  }
 0x28f   : > { %p3282_p0 = scmp.ge.s32.totalorder %s3281_s12, 2  ;;  %s1434_s11 = scalar_lea.sflag [#allocation4], %s1433_s1 }
 0x291   : > { %p2146_p2 = pnand %p3282_p0, %p2703_p7 }
 0x293   : > { %p2147_p9 = pneg %p2146_p2 }
 0x295   : > { %2527 = dma.done.wait (%p2147_p9), %s1434_s11, 2048  }
 0x296   : > { %2529 = vsyncadd (%p2147_p9), %s1434_s11, 4294965248  ;;  %s3283_s16 = sadd.s32 4294967294, %s3281_s12  }
 0x297   : > { %s1443_s4 = sand.u32 1, %s3283_s16  }
 0x298   : > { %s1444_s17 = scalar_lea.sflag [#allocation15], %s1443_s4 }
 0x299   : > { %2531 = dma.done.wait (%p2147_p9), %s1444_s17, 4096  }
 0x29a   : > { %2533 = vsyncadd (%p2147_p9), %s1444_s17, 4294963200  ;;  %s34_s14 = sadd.s32 1, %s3281_s12   ;;  %s3284_s18 = sld [smem:[#allocation24_spill]] }
 0x29b   : > { %p31_p4 = scmp.ge.s32.totalorder %s34_s14, 4   ;;  %s3285_s11 = sld [smem:[#allocation28_spill]] }
 0x29c   : > { %s3286_s26 = sld [smem:[#allocation26_spill]]  ;;  %s3287_s30 = smov %s2540_s10 }
 0x29d   : > { %s3289_s12 = smov %s2552_s13 }
 0x29e   :  { %33 = sbr.rel (!%p31_p4) target bundleno = 18 (0x12), region = 161 }
 0x2a0   : > { %s3288_s10 = smov %s3284_s18 }
 0x2a2   : > { %s3290_s13 = smov %s3286_s26 }
 0x2a3   :  { %1460 = vsyncpa [#allocation3], 1 }
 0x2a4   :  { %1462 = vsyncpa [#allocation3 + $0x1], 1 }
 0x2a5   :  { %1463 = vsyncpa [#allocation6], 1 }
 0x2a6   :  { %1465 = vsyncpa [#allocation6 + $0x1], 1 }
 0x2a7   :  { %1466 = vsyncpa [#allocation9], 1 }
 0x2a8   :  { %1467 = vsyncpa [#allocation12], 1 }
 0x2a9   :  { %1468 = vsyncpa [#allocation4], 1 }
 0x2aa   :  { %1470 = vsyncpa [#allocation4 + $0x1], 1 }
 0x2ab   :  { %1471 = vsyncpa [#allocation15], 1 }
 0x2ac   :  { %1473 = vsyncpa [#allocation15 + $0x1], 1 }

</bundles_post_ra>
